<compile_context>
chip_gen: v7x
topology: tpu7x:2x2x1
jax: 0.10.0
libtpu: 0.0.40
codegen_flags: <defaults>
</compile_context>

<pallas_src>
import functools

import jax
import jax.numpy as jnp
from jax import lax
from jax.experimental import pallas as pl
from jax.experimental.pallas import tpu as pltpu


_DEG_EPS = float(jnp.finfo(jnp.float32).eps)   # == torch.finfo(torch.float32).eps
_LN_EPS = 1e-5                                 # PyTorch LayerNorm default


def _round_up(x, m):
    return ((x + m - 1) // m) * m


def _pad2(a, rows, cols):
    r, c = a.shape
    return jnp.pad(a, ((0, rows - r), (0, cols - c)))


def _layer_norm_padded(x, w, b, true_d, num_pad):
    # Two-pass LayerNorm over a feature axis that is zero-padded from true_d to
    # true_d + num_pad columns.  The padded columns contribute exactly 0 to the
    # mean-sum and exactly mu^2 each to the centered square-sum, so subtracting
    # num_pad * mu^2 recovers the true-D variance without a mask.
    inv_d = 1.0 / true_d
    mu = jnp.sum(x, axis=-1, keepdims=True) * inv_d
    xc = x - mu
    var = (jnp.sum(xc * xc, axis=-1, keepdims=True) - num_pad * (mu * mu)) * inv_d
    var = jnp.maximum(var, 0.0)
    return xc * jax.lax.rsqrt(var + _LN_EPS) * w + b


def gcn_encoder_layer_kernel(
    h_ref, spm_ref, spmt_ref, sin_ref, sout_ref,
    wcat_ref, bcat_ref, bias_gcn_ref, gcn_ln_w_ref, gcn_ln_b_ref,
    w1_ref, b1_ref, w2_ref, b2_ref, fln_w_ref, fln_b_ref,
    out_ref,
    u_scr, g_scr,
    *, bblk, seq, dp, f_tile, n_f_chunks, true_d, num_pad,
):
    cdt = wcat_ref.dtype            # matmul compute dtype (f32 or bf16)
    m = bblk * seq

    hf = h_ref[...].reshape(m, dp)  # flattened (block_b*Sp, Dp) token slab
    h32 = hf.astype(jnp.float32)    # residual path

    # ---- fused input projections: one (m, Dp) @ (Dp, 2*Dp) MXU matmul.
    # Parked in a VMEM scratch so the aggregation loop can slice it via Ref
    # indexing (bounded live ranges).
    u = jnp.dot(hf, wcat_ref[...], preferred_element_type=jnp.float32) + bcat_ref[...]
    u_scr[...] = u.reshape(bblk, seq, 2 * dp)

    # ---- GCN aggregation per batch element.
    # spm^T arrives pre-transposed (no in-kernel XLU transpose); the degree
    # scales are precomputed f32 inputs (no in-kernel reductions); row scaling
    # commutes with the matmul so no scaled (S,S) copies are materialised.
    def agg_body(b, carry):
        agg = (sin_ref[b] *
               jnp.dot(spm_ref[b], u_scr[b, :, :dp].astype(cdt),
                       preferred_element_type=jnp.float32)
               + sout_ref[b] *
               jnp.dot(spmt_ref[b], u_scr[b, :, dp:].astype(cdt),
                       preferred_element_type=jnp.float32))
        g_scr[b] = agg
        return carry

    # TODO(synk): for S <= 128 on v6e/v7x the two aggregation matmuls could be
    # fused into one (S, 2S) @ (2S, Dp) matmul to fill the 256-deep MXU K.
    lax.fori_loop(0, bblk, agg_body, 0, unroll=bool(bblk <= 8))

    # ---- combine, layernorm, relu, residual ----
    g = g_scr[...].reshape(m, dp) + bias_gcn_ref[...]
    g = _layer_norm_padded(g, gcn_ln_w_ref[...], gcn_ln_b_ref[...], true_d, num_pad)
    g = jnp.maximum(g, 0.0)                       # activation_fn = relu
    x = g + h32                                   # residual_connection

    # ---- FFN: relu(fc1) -> fc2 -> residual -> final LN, hidden dim tiled ----
    xc = x.astype(cdt)

    def ffn_body(c, acc):
        y = jnp.dot(xc, w1_ref[c], preferred_element_type=jnp.float32) + b1_ref[c]
        y = jnp.maximum(y, 0.0)
        return acc + jnp.dot(y.astype(cdt), w2_ref[c],
                             preferred_element_type=jnp.float32)

    ffn = lax.fori_loop(0, n_f_chunks, ffn_body,
                        jnp.zeros((m, dp), jnp.float32),
                        unroll=bool(n_f_chunks <= 8))

    y = ffn + b2_ref[...] + x
    y = _layer_norm_padded(y, fln_w_ref[...], fln_b_ref[...], true_d, num_pad)
    out_ref[...] = y.reshape(bblk, seq, dp).astype(out_ref.dtype)


def _pick_vmem_limit():
    """~100-110 MiB on v5e/v6e (128 MiB physical), ~48 MiB on v7x (64 MiB)."""
    cap = None
    try:
        cap = getattr(pltpu.get_tpu_info(), "vmem_capacity_bytes", None)
    except Exception:
        cap = None
    if not cap:
        cap = 64 * 1024 * 1024
    return int(min(max(cap - 16 * 1024 * 1024, 32 * 1024 * 1024),
                   112 * 1024 * 1024))


def _weight_spec(shape, single_buffer):
    """Grid-invariant weight BlockSpec; single-buffered when supported."""
    index_map = lambda i: (0,) * len(shape)
    if single_buffer and hasattr(pl, "Buffered"):
        try:
            return pl.BlockSpec(shape, index_map, pipeline_mode=pl.Buffered(1))
        except TypeError:
            pass
    return pl.BlockSpec(shape, index_map)


def encoder_layer_forward(h_sbd, src_probs_matrix, params, *,
                          use_bf16=True, block_b=None, out_dtype=None,
                          single_buffer_weights=True):
    """h_sbd: (S, B, D) float32, src_probs_matrix: (B, S, S) float32."""
    S, B, D = h_sbd.shape
    F = params["w1"].shape[1]
    Dp = _round_up(D, 128)
    Sp = _round_up(S, 8)
    cdt = jnp.bfloat16 if use_bf16 else jnp.float32
    out_dtype = jnp.float32 if out_dtype is None else out_dtype

    # FFN hidden padding + chunking (bound the resident (m, F) intermediate).
    Fp = _round_up(F, 128)
    f_tile = Fp if Fp <= 512 else 512
    Fp = _round_up(Fp, f_tile)
    n_f_chunks = Fp // f_tile

    # (S, B, D) -> (B, Sp, Dp): batch-major, lane/sublane-dense zero padding.
    h_bsd = jnp.transpose(h_sbd, (1, 0, 2))
    h_bsd = jnp.pad(h_bsd, ((0, 0), (0, Sp - S), (0, Dp - D))).astype(cdt)
    spm_p = jnp.pad(src_probs_matrix,
                    ((0, 0), (0, Sp - S), (0, Sp - S))).astype(cdt)
    spmt_p = jnp.swapaxes(spm_p, 1, 2)     # pre-transposed adjacency

    # f32 degree scales computed once from the unpadded adjacency.
    d = src_probs_matrix.sum(-1)           # row sums    (B, S)
    dt = src_probs_matrix.sum(1)           # column sums (B, S)
    scale_in = (d * d + _DEG_EPS) ** -0.5
    scale_out = (dt * dt + _DEG_EPS) ** -0.5
    scale_in = jnp.pad(scale_in, ((0, 0), (0, Sp - S)))[..., None]    # (B, Sp, 1)
    scale_out = jnp.pad(scale_out, ((0, 0), (0, Sp - S)))[..., None]

    # Fuse W_in | W_out into one (Dp, 2*Dp) projection; fuse the Linear biases;
    # fold bias_in + bias_out (added after aggregation) into one vector.
    wcat = jnp.concatenate([_pad2(params["w_in"], Dp, Dp),
                            _pad2(params["w_out"], Dp, Dp)], axis=1).astype(cdt)
    bcat = jnp.concatenate([_pad2(params["b_in_lin"], 1, Dp),
                            _pad2(params["b_out_lin"], 1, Dp)], axis=1)
    bias_gcn = _pad2(params["bias_in"] + params["bias_out"], 1, Dp)
    gcn_ln_w = _pad2(params["gcn_ln_w"], 1, Dp)
    gcn_ln_b = _pad2(params["gcn_ln_b"], 1, Dp)
    fln_w = _pad2(params["fln_w"], 1, Dp)
    fln_b = _pad2(params["fln_b"], 1, Dp)
    b2 = _pad2(params["b2"], 1, Dp)

    # FFN weights reshaped into hidden-dim chunks (leading-axis indexed in-kernel).
    w1 = _pad2(params["w1"], Dp, Fp).reshape(Dp, n_f_chunks, f_tile)
    w1 = jnp.transpose(w1, (1, 0, 2)).astype(cdt)                 # (nc, Dp, FT)
    b1 = _pad2(params["b1"], 1, Fp).reshape(1, n_f_chunks, f_tile)
    b1 = jnp.transpose(b1, (1, 0, 2))                              # (nc, 1, FT)
    w2 = _pad2(params["w2"], Fp, Dp).reshape(n_f_chunks, f_tile, Dp).astype(cdt)

    if block_b is None:
        # ~512 MXU rows per grid step, but keep >= 2 grid steps so both v7x
        # TensorCores get work (harmless on single-TC v5e/v6e).
        target = max(1, min(16, 512 // max(Sp, 1)))
        block_b = 1
        for c in range(1, B + 1):
            if B % c == 0 and c <= target:
                block_b = c
        if B > 1 and B // block_b < 2:
            block_b = max(c for c in range(1, B) if B % c == 0)
    assert B % block_b == 0, "block_b must divide the batch size"
    nb = B // block_b

    kernel = functools.partial(
        gcn_encoder_layer_kernel, bblk=block_b, seq=Sp, dp=Dp,
        f_tile=f_tile, n_f_chunks=n_f_chunks, true_d=D, num_pad=Dp - D)

    batch3 = lambda i: (i, 0, 0)

    def run(single_buffer):
        in_specs = [
            pl.BlockSpec((block_b, Sp, Dp), batch3),      # h (batch-major, padded)
            pl.BlockSpec((block_b, Sp, Sp), batch3),      # src_probs_matrix
            pl.BlockSpec((block_b, Sp, Sp), batch3),      # src_probs_matrix^T
            pl.BlockSpec((block_b, Sp, 1), batch3),       # row degree scale (f32)
            pl.BlockSpec((block_b, Sp, 1), batch3),       # col degree scale (f32)
            _weight_spec((Dp, 2 * Dp), single_buffer),    # fused [W_in | W_out]
            _weight_spec((1, 2 * Dp), single_buffer),     # fused linear biases
            _weight_spec((1, Dp), single_buffer),         # bias_in + bias_out
            _weight_spec((1, Dp), single_buffer),         # gcn LN weight
            _weight_spec((1, Dp), single_buffer),         # gcn LN bias
            _weight_spec((n_f_chunks, Dp, f_tile), single_buffer),  # fc1 w chunks
            _weight_spec((n_f_chunks, 1, f_tile), single_buffer),   # fc1 b chunks
            _weight_spec((n_f_chunks, f_tile, Dp), single_buffer),  # fc2 w chunks
            _weight_spec((1, Dp), single_buffer),         # fc2 bias
            _weight_spec((1, Dp), single_buffer),         # final LN weight
            _weight_spec((1, Dp), single_buffer),         # final LN bias
        ]
        return pl.pallas_call(
            kernel,
            out_shape=jax.ShapeDtypeStruct((B, Sp, Dp), out_dtype),
            grid=(nb,),
            in_specs=in_specs,
            out_specs=pl.BlockSpec((block_b, Sp, Dp), batch3),
            scratch_shapes=[pltpu.VMEM((block_b, Sp, 2 * Dp), jnp.float32),
                            pltpu.VMEM((block_b, Sp, Dp), jnp.float32)],
            compiler_params=pltpu.CompilerParams(
                dimension_semantics=("parallel",),
                vmem_limit_bytes=_pick_vmem_limit()),
        )(h_bsd, spm_p, spmt_p, scale_in, scale_out,
          wcat, bcat, bias_gcn, gcn_ln_w, gcn_ln_b,
          w1, b1, w2, b2, fln_w, fln_b)

    if single_buffer_weights:
        try:
            out = run(True)
        except Exception:          # pipeline_mode not supported -> double-buffered
            out = run(False)
    else:
        out = run(False)

    out = out[:, :S, :D]
    return jnp.transpose(out, (1, 0, 2))


def reference_forward(h_sbd, spm, params):
    """Pure-JAX reference mirroring the PyTorch forward exactly (f32)."""
    eps = _DEG_EPS
    h = jnp.transpose(h_sbd, (1, 0, 2))               # (B, S, D)

    u_in = h @ params["w_in"] + params["b_in_lin"]
    d = spm.sum(-1)[..., None]                        # (B, S, 1)
    u_in = jnp.matmul(spm * (d * d + eps) ** -0.5, u_in) + params["bias_in"]

    spm_t = jnp.swapaxes(spm, 1, 2)
    d_t = spm_t.sum(-1)[..., None]
    u_out = h @ params["w_out"] + params["b_out_lin"]
    u_out = jnp.matmul(spm_t * (d_t * d_t + eps) ** -0.5, u_out) + params["bias_out"]

    def ln(x, w, b):
        mu = x.mean(-1, keepdims=True)
        var = ((x - mu) ** 2).mean(-1, keepdims=True)
        return (x - mu) / jnp.sqrt(var + _LN_EPS) * w + b

    g = ln(u_in + u_out, params["gcn_ln_w"], params["gcn_ln_b"])
    g = jnp.maximum(g, 0.0)
    x = g + h
    y = jnp.maximum(x @ params["w1"] + params["b1"], 0.0)
    y = y @ params["w2"] + params["b2"]
    y = y + x
    y = ln(y, params["fln_w"], params["fln_b"])
    return jnp.transpose(y, (1, 0, 2))


def make_params(key, embed_dim, ffn_dim):
    ks = jax.random.split(key, 8)
    scale = 0.1
    f32 = jnp.float32
    return {
        # Linear weights stored as (in, out) so the kernel does x @ W directly.
        "w_in": scale * jax.random.normal(ks[0], (embed_dim, embed_dim), f32),
        "b_in_lin": scale * jax.random.normal(ks[1], (1, embed_dim), f32),
        "w_out": scale * jax.random.normal(ks[2], (embed_dim, embed_dim), f32),
        "b_out_lin": scale * jax.random.normal(ks[3], (1, embed_dim), f32),
        # Extra GCN biases (nn.Parameter(torch.zeros(embed_dim)))
        "bias_in": jnp.zeros((1, embed_dim), f32),
        "bias_out": jnp.zeros((1, embed_dim), f32),
        # LayerNorm params
        "gcn_ln_w": jnp.ones((1, embed_dim), f32),
        "gcn_ln_b": jnp.zeros((1, embed_dim), f32),
        "fln_w": jnp.ones((1, embed_dim), f32),
        "fln_b": jnp.zeros((1, embed_dim), f32),
        # FFN
        "w1": scale * jax.random.normal(ks[4], (embed_dim, ffn_dim), f32),
        "b1": scale * jax.random.normal(ks[5], (1, ffn_dim), f32),
        "w2": scale * jax.random.normal(ks[6], (ffn_dim, embed_dim), f32),
        "b2": scale * jax.random.normal(ks[7], (1, embed_dim), f32),
    }


if __name__ == "__main__":
    SEQ, BATCH, EMBED, FFN = 8, 2, 32, 64

    key = jax.random.PRNGKey(0)
    k_h, k_p, k_params = jax.random.split(key, 3)

    h = jax.random.normal(k_h, (SEQ, BATCH, EMBED), jnp.float32)
    # non-negative "probability" adjacency matrix (B, S, S)
    src_probs_matrix = jax.random.uniform(k_p, (BATCH, SEQ, SEQ), jnp.float32)

    params = make_params(k_params, EMBED, FFN)

    ref = reference_forward(h, src_probs_matrix, params)

    # Exact-semantics path (f32 matmuls, f32 output) -- tight check vs. reference.
    out_f32 = encoder_layer_forward(h, src_probs_matrix, params, use_bf16=False)
    out_f32 = jax.block_until_ready(out_f32)
    assert out_f32.shape == (SEQ, BATCH, EMBED)
    assert jnp.allclose(out_f32, ref, atol=1e-4, rtol=1e-4), "f32 kernel mismatch"

    # Fast path (bf16 MXU operands + bf16 output, f32 accumulate/element-wise).
    out_bf16 = encoder_layer_forward(h, src_probs_matrix, params,
                                     use_bf16=True, out_dtype=jnp.bfloat16)
    out_bf16 = jax.block_until_ready(out_bf16)
    assert out_bf16.shape == (SEQ, BATCH, EMBED)
    assert jnp.allclose(out_bf16.astype(jnp.float32), ref,
                        atol=1e-1, rtol=1e-1), "bf16 kernel deviates"

    print("KERNEL_OK")
</pallas_src>

<mosaic_0001>
module attributes {stable_mosaic.version = 11 : i64} {
  func.func @gcn_encoder_layer_kernel(%arg0: i32, %arg1: memref<1x8x128xf32, #tpu.memory_space<vmem>>, %arg2: memref<1x8x8xf32, #tpu.memory_space<vmem>>, %arg3: memref<1x8x8xf32, #tpu.memory_space<vmem>>, %arg4: memref<1x8x1xf32, #tpu.memory_space<vmem>>, %arg5: memref<1x8x1xf32, #tpu.memory_space<vmem>>, %arg6: memref<128x256xf32, #tpu.memory_space<vmem>>, %arg7: memref<1x256xf32, #tpu.memory_space<vmem>>, %arg8: memref<1x128xf32, #tpu.memory_space<vmem>>, %arg9: memref<1x128xf32, #tpu.memory_space<vmem>>, %arg10: memref<1x128xf32, #tpu.memory_space<vmem>>, %arg11: memref<1x128x128xf32, #tpu.memory_space<vmem>>, %arg12: memref<1x1x128xf32, #tpu.memory_space<vmem>>, %arg13: memref<1x128x128xf32, #tpu.memory_space<vmem>>, %arg14: memref<1x128xf32, #tpu.memory_space<vmem>>, %arg15: memref<1x128xf32, #tpu.memory_space<vmem>>, %arg16: memref<1x128xf32, #tpu.memory_space<vmem>>, %arg17: memref<1x8x128xf32, #tpu.memory_space<vmem>>, %arg18: memref<1x8x256xf32, #tpu.memory_space<vmem>>, %arg19: memref<1x8x128xf32, #tpu.memory_space<vmem>>) attributes {dimension_semantics = [#tpu.dimension_semantics<parallel>], iteration_bounds = array<i64: 2>, scalar_prefetch = 0 : i64, scratch_operands = 2 : i64, tpu.core_type = #tpu.core_type<tc>, window_params = [{transform_indices = @transform_0, window_bounds = array<i64: 1, 8, 128>}, {transform_indices = @transform_1, window_bounds = array<i64: 1, 8, 8>}, {transform_indices = @transform_2, window_bounds = array<i64: 1, 8, 8>}, {transform_indices = @transform_3, window_bounds = array<i64: 1, 8, 1>}, {transform_indices = @transform_4, window_bounds = array<i64: 1, 8, 1>}, {pipeline_mode = #tpu.pipeline_mode<synchronous>, transform_indices = @transform_5, window_bounds = array<i64: 128, 256>}, {pipeline_mode = #tpu.pipeline_mode<synchronous>, transform_indices = @transform_6, window_bounds = array<i64: 1, 256>}, {pipeline_mode = #tpu.pipeline_mode<synchronous>, transform_indices = @transform_7, window_bounds = array<i64: 1, 128>}, {pipeline_mode = #tpu.pipeline_mode<synchronous>, transform_indices = @transform_8, window_bounds = array<i64: 1, 128>}, {pipeline_mode = #tpu.pipeline_mode<synchronous>, transform_indices = @transform_9, window_bounds = array<i64: 1, 128>}, {pipeline_mode = #tpu.pipeline_mode<synchronous>, transform_indices = @transform_10, window_bounds = array<i64: 1, 128, 128>}, {pipeline_mode = #tpu.pipeline_mode<synchronous>, transform_indices = @transform_11, window_bounds = array<i64: 1, 1, 128>}, {pipeline_mode = #tpu.pipeline_mode<synchronous>, transform_indices = @transform_12, window_bounds = array<i64: 1, 128, 128>}, {pipeline_mode = #tpu.pipeline_mode<synchronous>, transform_indices = @transform_13, window_bounds = array<i64: 1, 128>}, {pipeline_mode = #tpu.pipeline_mode<synchronous>, transform_indices = @transform_14, window_bounds = array<i64: 1, 128>}, {pipeline_mode = #tpu.pipeline_mode<synchronous>, transform_indices = @transform_15, window_bounds = array<i64: 1, 128>}, {transform_indices = @transform_16, window_bounds = array<i64: 1, 8, 128>}]} {
    %c0 = arith.constant 0 : index
    %c0_0 = arith.constant 0 : index
    %c0_1 = arith.constant 0 : index
    %0 = vector.load %arg1[%c0, %c0_0, %c0_1] : memref<1x8x128xf32, #tpu.memory_space<vmem>>, vector<1x8x128xf32>
    %1 = vector.shape_cast %0 : vector<1x8x128xf32> to vector<8x128xf32>
    %c0_2 = arith.constant 0 : index
    %c0_3 = arith.constant 0 : index
    %2 = vector.load %arg6[%c0_2, %c0_3] : memref<128x256xf32, #tpu.memory_space<vmem>>, vector<128x256xf32>
    %cst = arith.constant dense<0.000000e+00> : vector<8x256xf32>
    %3 = tpu.matmul %1, %2, %cst {dimension_numbers = #tpu.dot_dimension_numbers<[1], [0], [0], [1], [0, 0, 1, 1], [], []>} : vector<8x128xf32>, vector<128x256xf32>, vector<8x256xf32> -> vector<8x256xf32>
    %c0_4 = arith.constant 0 : index
    %c0_5 = arith.constant 0 : index
    %4 = vector.load %arg7[%c0_4, %c0_5] : memref<1x256xf32, #tpu.memory_space<vmem>>, vector<1x256xf32>
    %5 = vector.broadcast %4 : vector<1x256xf32> to vector<8x256xf32>
    %6 = arith.addf %3, %5 : vector<8x256xf32>
    %7 = vector.shape_cast %6 : vector<8x256xf32> to vector<1x8x256xf32>
    %c0_6 = arith.constant 0 : index
    %c0_7 = arith.constant 0 : index
    %c0_8 = arith.constant 0 : index
    %8 = vector.load %arg18[%c0_6, %c0_7, %c0_8] : memref<1x8x256xf32, #tpu.memory_space<vmem>>, vector<1x8x256xf32>
    tpu.vector_store %arg18[%c0_6, %c0_7, %c0_8], %7 {strides = array<i32>} : memref<1x8x256xf32, #tpu.memory_space<vmem>>, vector<1x8x256xf32>,
    %c0_i32 = arith.constant 0 : i32
    %9 = arith.index_cast %c0_i32 : i32 to index
    %c0_9 = arith.constant 0 : index
    %c0_10 = arith.constant 0 : index
    %10 = vector.load %arg4[%9, %c0_9, %c0_10] : memref<1x8x1xf32, #tpu.memory_space<vmem>>, vector<1x8x1xf32>
    %11 = vector.shape_cast %10 : vector<1x8x1xf32> to vector<8x1xf32>
    %12 = arith.index_cast %c0_i32 : i32 to index
    %c0_11 = arith.constant 0 : index
    %c0_12 = arith.constant 0 : index
    %13 = vector.load %arg2[%12, %c0_11, %c0_12] : memref<1x8x8xf32, #tpu.memory_space<vmem>>, vector<1x8x8xf32>
    %14 = vector.shape_cast %13 : vector<1x8x8xf32> to vector<8x8xf32>
    %15 = arith.index_cast %c0_i32 : i32 to index
    %c0_13 = arith.constant 0 : index
    %c0_14 = arith.constant 0 : index
    %16 = vector.load %arg18[%15, %c0_13, %c0_14] : memref<1x8x256xf32, #tpu.memory_space<vmem>>, vector<1x8x128xf32>
    %17 = vector.shape_cast %16 : vector<1x8x128xf32> to vector<8x128xf32>
    %cst_15 = arith.constant dense<0.000000e+00> : vector<8x128xf32>
    %18 = tpu.matmul %14, %17, %cst_15 {dimension_numbers = #tpu.dot_dimension_numbers<[1], [0], [0], [1], [0, 0, 1, 1], [], []>} : vector<8x8xf32>, vector<8x128xf32>, vector<8x128xf32> -> vector<8x128xf32>
    %19 = vector.broadcast %11 : vector<8x1xf32> to vector<8x128xf32>
    %20 = arith.mulf %19, %18 : vector<8x128xf32>
    %21 = arith.index_cast %c0_i32 : i32 to index
    %c0_16 = arith.constant 0 : index
    %c0_17 = arith.constant 0 : index
    %22 = vector.load %arg5[%21, %c0_16, %c0_17] : memref<1x8x1xf32, #tpu.memory_space<vmem>>, vector<1x8x1xf32>
    %23 = vector.shape_cast %22 : vector<1x8x1xf32> to vector<8x1xf32>
    %24 = arith.index_cast %c0_i32 : i32 to index
    %c0_18 = arith.constant 0 : index
    %c0_19 = arith.constant 0 : index
    %25 = vector.load %arg3[%24, %c0_18, %c0_19] : memref<1x8x8xf32, #tpu.memory_space<vmem>>, vector<1x8x8xf32>
    %26 = vector.shape_cast %25 : vector<1x8x8xf32> to vector<8x8xf32>
    %27 = arith.index_cast %c0_i32 : i32 to index
    %c0_20 = arith.constant 0 : index
    %c128 = arith.constant 128 : index
    %28 = vector.load %arg18[%27, %c0_20, %c128] : memref<1x8x256xf32, #tpu.memory_space<vmem>>, vector<1x8x128xf32>
    %29 = vector.shape_cast %28 : vector<1x8x128xf32> to vector<8x128xf32>
    %cst_21 = arith.constant dense<0.000000e+00> : vector<8x128xf32>
    %30 = tpu.matmul %26, %29, %cst_21 {dimension_numbers = #tpu.dot_dimension_numbers<[1], [0], [0], [1], [0, 0, 1, 1], [], []>} : vector<8x8xf32>, vector<8x128xf32>, vector<8x128xf32> -> vector<8x128xf32>
    %31 = vector.broadcast %23 : vector<8x1xf32> to vector<8x128xf32>
    %32 = arith.mulf %31, %30 : vector<8x128xf32>
    %33 = arith.addf %20, %32 : vector<8x128xf32>
    %34 = arith.index_cast %c0_i32 : i32 to index
    %c0_22 = arith.constant 0 : index
    %c0_23 = arith.constant 0 : index
    %35 = vector.load %arg19[%34, %c0_22, %c0_23] : memref<1x8x128xf32, #tpu.memory_space<vmem>>, vector<1x8x128xf32>
    %36 = vector.shape_cast %35 : vector<1x8x128xf32> to vector<8x128xf32>
    %37 = vector.shape_cast %33 : vector<8x128xf32> to vector<1x8x128xf32>
    tpu.vector_store %arg19[%34, %c0_22, %c0_23], %37 {strides = array<i32>} : memref<1x8x128xf32, #tpu.memory_space<vmem>>, vector<1x8x128xf32>,
    %c1_i32 = arith.constant 1 : i32
    %c0_24 = arith.constant 0 : index
    %c0_25 = arith.constant 0 : index
    %c0_26 = arith.constant 0 : index
    %38 = vector.load %arg19[%c0_24, %c0_25, %c0_26] : memref<1x8x128xf32, #tpu.memory_space<vmem>>, vector<1x8x128xf32>
    %39 = vector.shape_cast %38 : vector<1x8x128xf32> to vector<8x128xf32>
    %c0_27 = arith.constant 0 : index
    %c0_28 = arith.constant 0 : index
    %40 = vector.load %arg8[%c0_27, %c0_28] : memref<1x128xf32, #tpu.memory_space<vmem>>, vector<1x128xf32>
    %41 = vector.broadcast %40 : vector<1x128xf32> to vector<8x128xf32>
    %42 = arith.addf %39, %41 : vector<8x128xf32>
    %c0_29 = arith.constant 0 : index
    %c0_30 = arith.constant 0 : index
    %43 = vector.load %arg9[%c0_29, %c0_30] : memref<1x128xf32, #tpu.memory_space<vmem>>, vector<1x128xf32>
    %c0_31 = arith.constant 0 : index
    %c0_32 = arith.constant 0 : index
    %44 = vector.load %arg10[%c0_31, %c0_32] : memref<1x128xf32, #tpu.memory_space<vmem>>, vector<1x128xf32>
    %cst_33 = arith.constant dense<0.000000e+00> : vector<8xf32>
    %45 = vector.multi_reduction <add>, %42, %cst_33 [1] : vector<8x128xf32> to vector<8xf32>
    %46 = vector.shape_cast %45 : vector<8xf32> to vector<8x1xf32>
    %cst_34 = arith.constant 3.125000e-02 : f32
    %47 = vector.broadcast %cst_34 : f32 to vector<8x1xf32>
    %48 = arith.mulf %46, %47 : vector<8x1xf32>
    %49 = vector.broadcast %48 : vector<8x1xf32> to vector<8x128xf32>
    %50 = arith.subf %42, %49 : vector<8x128xf32>
    %51 = arith.mulf %50, %50 : vector<8x128xf32>
    %cst_35 = arith.constant dense<0.000000e+00> : vector<8xf32>
    %52 = vector.multi_reduction <add>, %51, %cst_35 [1] : vector<8x128xf32> to vector<8xf32>
    %53 = vector.shape_cast %52 : vector<8xf32> to vector<8x1xf32>
    %54 = arith.mulf %48, %48 : vector<8x1xf32>
    %cst_36 = arith.constant 9.600000e+01 : f32
    %55 = vector.broadcast %cst_36 : f32 to vector<8x1xf32>
    %56 = arith.mulf %55, %54 : vector<8x1xf32>
    %57 = arith.subf %53, %56 : vector<8x1xf32>
    %cst_37 = arith.constant 3.125000e-02 : f32
    %58 = vector.broadcast %cst_37 : f32 to vector<8x1xf32>
    %59 = arith.mulf %57, %58 : vector<8x1xf32>
    %cst_38 = arith.constant 0.000000e+00 : f32
    %60 = vector.broadcast %cst_38 : f32 to vector<8x1xf32>
    %61 = arith.maximumf %59, %60 : vector<8x1xf32>
    %cst_39 = arith.constant 9.99999974E-6 : f32
    %62 = vector.broadcast %cst_39 : f32 to vector<8x1xf32>
    %63 = arith.addf %61, %62 : vector<8x1xf32>
    %64 = math.rsqrt %63 : vector<8x1xf32>
    %65 = vector.broadcast %64 : vector<8x1xf32> to vector<8x128xf32>
    %66 = arith.mulf %50, %65 : vector<8x128xf32>
    %67 = vector.broadcast %43 : vector<1x128xf32> to vector<8x128xf32>
    %68 = arith.mulf %66, %67 : vector<8x128xf32>
    %69 = vector.broadcast %44 : vector<1x128xf32> to vector<8x128xf32>
    %70 = arith.addf %68, %69 : vector<8x128xf32>
    %cst_40 = arith.constant 0.000000e+00 : f32
    %71 = vector.broadcast %cst_40 : f32 to vector<8x128xf32>
    %72 = arith.maximumf %70, %71 : vector<8x128xf32>
    %73 = arith.addf %72, %1 : vector<8x128xf32>
    %cst_41 = arith.constant 0.000000e+00 : f32
    %74 = vector.broadcast %cst_41 : f32 to vector<8x128xf32>
    %c0_i32_42 = arith.constant 0 : i32
    %75 = arith.index_cast %c0_i32_42 : i32 to index
    %c0_43 = arith.constant 0 : index
    %c0_44 = arith.constant 0 : index
    %76 = vector.load %arg11[%75, %c0_43, %c0_44] : memref<1x128x128xf32, #tpu.memory_space<vmem>>, vector<1x128x128xf32>
    %77 = vector.shape_cast %76 : vector<1x128x128xf32> to vector<128x128xf32>
    %cst_45 = arith.constant dense<0.000000e+00> : vector<8x128xf32>
    %78 = tpu.matmul %73, %77, %cst_45 {dimension_numbers = #tpu.dot_dimension_numbers<[1], [0], [0], [1], [0, 0, 1, 1], [], []>} : vector<8x128xf32>, vector<128x128xf32>, vector<8x128xf32> -> vector<8x128xf32>
    %79 = arith.index_cast %c0_i32_42 : i32 to index
    %c0_46 = arith.constant 0 : index
    %c0_47 = arith.constant 0 : index
    %80 = vector.load %arg12[%79, %c0_46, %c0_47] : memref<1x1x128xf32, #tpu.memory_space<vmem>>, vector<1x1x128xf32>
    %81 = vector.shape_cast %80 : vector<1x1x128xf32> to vector<1x128xf32>
    %82 = vector.broadcast %81 : vector<1x128xf32> to vector<8x128xf32>
    %83 = arith.addf %78, %82 : vector<8x128xf32>
    %cst_48 = arith.constant 0.000000e+00 : f32
    %84 = vector.broadcast %cst_48 : f32 to vector<8x128xf32>
    %85 = arith.maximumf %83, %84 : vector<8x128xf32>
    %86 = arith.index_cast %c0_i32_42 : i32 to index
    %c0_49 = arith.constant 0 : index
    %c0_50 = arith.constant 0 : index
    %87 = vector.load %arg13[%86, %c0_49, %c0_50] : memref<1x128x128xf32, #tpu.memory_space<vmem>>, vector<1x128x128xf32>
    %88 = vector.shape_cast %87 : vector<1x128x128xf32> to vector<128x128xf32>
    %cst_51 = arith.constant dense<0.000000e+00> : vector<8x128xf32>
    %89 = tpu.matmul %85, %88, %cst_51 {dimension_numbers = #tpu.dot_dimension_numbers<[1], [0], [0], [1], [0, 0, 1, 1], [], []>} : vector<8x128xf32>, vector<128x128xf32>, vector<8x128xf32> -> vector<8x128xf32>
    %90 = arith.addf %74, %89 : vector<8x128xf32>
    %c1_i32_52 = arith.constant 1 : i32
    %c0_53 = arith.constant 0 : index
    %c0_54 = arith.constant 0 : index
    %91 = vector.load %arg14[%c0_53, %c0_54] : memref<1x128xf32, #tpu.memory_space<vmem>>, vector<1x128xf32>
    %92 = vector.broadcast %91 : vector<1x128xf32> to vector<8x128xf32>
    %93 = arith.addf %90, %92 : vector<8x128xf32>
    %94 = arith.addf %93, %73 : vector<8x128xf32>
    %c0_55 = arith.constant 0 : index
    %c0_56 = arith.constant 0 : index
    %95 = vector.load %arg15[%c0_55, %c0_56] : memref<1x128xf32, #tpu.memory_space<vmem>>, vector<1x128xf32>
    %c0_57 = arith.constant 0 : index
    %c0_58 = arith.constant 0 : index
    %96 = vector.load %arg16[%c0_57, %c0_58] : memref<1x128xf32, #tpu.memory_space<vmem>>, vector<1x128xf32>
    %cst_59 = arith.constant dense<0.000000e+00> : vector<8xf32>
    %97 = vector.multi_reduction <add>, %94, %cst_59 [1] : vector<8x128xf32> to vector<8xf32>
    %98 = vector.shape_cast %97 : vector<8xf32> to vector<8x1xf32>
    %cst_60 = arith.constant 3.125000e-02 : f32
    %99 = vector.broadcast %cst_60 : f32 to vector<8x1xf32>
    %100 = arith.mulf %98, %99 : vector<8x1xf32>
    %101 = vector.broadcast %100 : vector<8x1xf32> to vector<8x128xf32>
    %102 = arith.subf %94, %101 : vector<8x128xf32>
    %103 = arith.mulf %102, %102 : vector<8x128xf32>
    %cst_61 = arith.constant dense<0.000000e+00> : vector<8xf32>
    %104 = vector.multi_reduction <add>, %103, %cst_61 [1] : vector<8x128xf32> to vector<8xf32>
    %105 = vector.shape_cast %104 : vector<8xf32> to vector<8x1xf32>
    %106 = arith.mulf %100, %100 : vector<8x1xf32>
    %cst_62 = arith.constant 9.600000e+01 : f32
    %107 = vector.broadcast %cst_62 : f32 to vector<8x1xf32>
    %108 = arith.mulf %107, %106 : vector<8x1xf32>
    %109 = arith.subf %105, %108 : vector<8x1xf32>
    %cst_63 = arith.constant 3.125000e-02 : f32
    %110 = vector.broadcast %cst_63 : f32 to vector<8x1xf32>
    %111 = arith.mulf %109, %110 : vector<8x1xf32>
    %cst_64 = arith.constant 0.000000e+00 : f32
    %112 = vector.broadcast %cst_64 : f32 to vector<8x1xf32>
    %113 = arith.maximumf %111, %112 : vector<8x1xf32>
    %cst_65 = arith.constant 9.99999974E-6 : f32
    %114 = vector.broadcast %cst_65 : f32 to vector<8x1xf32>
    %115 = arith.addf %113, %114 : vector<8x1xf32>
    %116 = math.rsqrt %115 : vector<8x1xf32>
    %117 = vector.broadcast %116 : vector<8x1xf32> to vector<8x128xf32>
    %118 = arith.mulf %102, %117 : vector<8x128xf32>
    %119 = vector.broadcast %95 : vector<1x128xf32> to vector<8x128xf32>
    %120 = arith.mulf %118, %119 : vector<8x128xf32>
    %121 = vector.broadcast %96 : vector<1x128xf32> to vector<8x128xf32>
    %122 = arith.addf %120, %121 : vector<8x128xf32>
    %123 = vector.shape_cast %122 : vector<8x128xf32> to vector<1x8x128xf32>
    %c0_66 = arith.constant 0 : index
    %c0_67 = arith.constant 0 : index
    %c0_68 = arith.constant 0 : index
    %124 = vector.load %arg17[%c0_66, %c0_67, %c0_68] : memref<1x8x128xf32, #tpu.memory_space<vmem>>, vector<1x8x128xf32>
    tpu.vector_store %arg17[%c0_66, %c0_67, %c0_68], %123 {strides = array<i32>} : memref<1x8x128xf32, #tpu.memory_space<vmem>>, vector<1x8x128xf32>,
    return
  }
  func.func @transform_0(%arg0: i32) -> (i32, i32, i32) {
    %c0_i32 = arith.constant 0 : i32
    %c0_i32_0 = arith.constant 0 : i32
    %c0_i32_1 = arith.constant 0 : i32
    return %arg0, %c0_i32, %c0_i32_0 : i32, i32, i32
  }
  func.func @transform_1(%arg0: i32) -> (i32, i32, i32) {
    %c0_i32 = arith.constant 0 : i32
    %c0_i32_0 = arith.constant 0 : i32
    %c0_i32_1 = arith.constant 0 : i32
    return %arg0, %c0_i32, %c0_i32_0 : i32, i32, i32
  }
  func.func @transform_2(%arg0: i32) -> (i32, i32, i32) {
    %c0_i32 = arith.constant 0 : i32
    %c0_i32_0 = arith.constant 0 : i32
    %c0_i32_1 = arith.constant 0 : i32
    return %arg0, %c0_i32, %c0_i32_0 : i32, i32, i32
  }
  func.func @transform_3(%arg0: i32) -> (i32, i32, i32) {
    %c0_i32 = arith.constant 0 : i32
    %c0_i32_0 = arith.constant 0 : i32
    %c0_i32_1 = arith.constant 0 : i32
    return %arg0, %c0_i32, %c0_i32_0 : i32, i32, i32
  }
  func.func @transform_4(%arg0: i32) -> (i32, i32, i32) {
    %c0_i32 = arith.constant 0 : i32
    %c0_i32_0 = arith.constant 0 : i32
    %c0_i32_1 = arith.constant 0 : i32
    return %arg0, %c0_i32, %c0_i32_0 : i32, i32, i32
  }
  func.func @transform_5(%arg0: i32) -> (i32, i32) {
    %c0_i32 = arith.constant 0 : i32
    %c0_i32_0 = arith.constant 0 : i32
    %c0_i32_1 = arith.constant 0 : i32
    return %c0_i32, %c0_i32_0 : i32, i32
  }
  func.func @transform_6(%arg0: i32) -> (i32, i32) {
    %c0_i32 = arith.constant 0 : i32
    %c0_i32_0 = arith.constant 0 : i32
    %c0_i32_1 = arith.constant 0 : i32
    return %c0_i32, %c0_i32_0 : i32, i32
  }
  func.func @transform_7(%arg0: i32) -> (i32, i32) {
    %c0_i32 = arith.constant 0 : i32
    %c0_i32_0 = arith.constant 0 : i32
    %c0_i32_1 = arith.constant 0 : i32
    return %c0_i32, %c0_i32_0 : i32, i32
  }
  func.func @transform_8(%arg0: i32) -> (i32, i32) {
    %c0_i32 = arith.constant 0 : i32
    %c0_i32_0 = arith.constant 0 : i32
    %c0_i32_1 = arith.constant 0 : i32
    return %c0_i32, %c0_i32_0 : i32, i32
  }
  func.func @transform_9(%arg0: i32) -> (i32, i32) {
    %c0_i32 = arith.constant 0 : i32
    %c0_i32_0 = arith.constant 0 : i32
    %c0_i32_1 = arith.constant 0 : i32
    return %c0_i32, %c0_i32_0 : i32, i32
  }
  func.func @transform_10(%arg0: i32) -> (i32, i32, i32) {
    %c0_i32 = arith.constant 0 : i32
    %c0_i32_0 = arith.constant 0 : i32
    %c0_i32_1 = arith.constant 0 : i32
    %c0_i32_2 = arith.constant 0 : i32
    return %c0_i32, %c0_i32_0, %c0_i32_1 : i32, i32, i32
  }
  func.func @transform_11(%arg0: i32) -> (i32, i32, i32) {
    %c0_i32 = arith.constant 0 : i32
    %c0_i32_0 = arith.constant 0 : i32
    %c0_i32_1 = arith.constant 0 : i32
    %c0_i32_2 = arith.constant 0 : i32
    return %c0_i32, %c0_i32_0, %c0_i32_1 : i32, i32, i32
  }
  func.func @transform_12(%arg0: i32) -> (i32, i32, i32) {
    %c0_i32 = arith.constant 0 : i32
    %c0_i32_0 = arith.constant 0 : i32
    %c0_i32_1 = arith.constant 0 : i32
    %c0_i32_2 = arith.constant 0 : i32
    return %c0_i32, %c0_i32_0, %c0_i32_1 : i32, i32, i32
  }
  func.func @transform_13(%arg0: i32) -> (i32, i32) {
    %c0_i32 = arith.constant 0 : i32
    %c0_i32_0 = arith.constant 0 : i32
    %c0_i32_1 = arith.constant 0 : i32
    return %c0_i32, %c0_i32_0 : i32, i32
  }
  func.func @transform_14(%arg0: i32) -> (i32, i32) {
    %c0_i32 = arith.constant 0 : i32
    %c0_i32_0 = arith.constant 0 : i32
    %c0_i32_1 = arith.constant 0 : i32
    return %c0_i32, %c0_i32_0 : i32, i32
  }
  func.func @transform_15(%arg0: i32) -> (i32, i32) {
    %c0_i32 = arith.constant 0 : i32
    %c0_i32_0 = arith.constant 0 : i32
    %c0_i32_1 = arith.constant 0 : i32
    return %c0_i32, %c0_i32_0 : i32, i32
  }
  func.func @transform_16(%arg0: i32) -> (i32, i32, i32) {
    %c0_i32 = arith.constant 0 : i32
    %c0_i32_0 = arith.constant 0 : i32
    %c0_i32_1 = arith.constant 0 : i32
    return %arg0, %c0_i32, %c0_i32_0 : i32, i32, i32
  }
}

module attributes {stable_mosaic.version = 11 : i64} {
  func.func @gcn_encoder_layer_kernel(%arg0: i32, %arg1: memref<1x8x128xf32, #tpu.memory_space<vmem>>, %arg2: memref<1x8x8xf32, #tpu.memory_space<vmem>>, %arg3: memref<1x8x8xf32, #tpu.memory_space<vmem>>, %arg4: memref<1x8x1xf32, #tpu.memory_space<vmem>>, %arg5: memref<1x8x1xf32, #tpu.memory_space<vmem>>, %arg6: memref<128x256xf32, #tpu.memory_space<vmem>>, %arg7: memref<1x256xf32, #tpu.memory_space<vmem>>, %arg8: memref<1x128xf32, #tpu.memory_space<vmem>>, %arg9: memref<1x128xf32, #tpu.memory_space<vmem>>, %arg10: memref<1x128xf32, #tpu.memory_space<vmem>>, %arg11: memref<1x128x128xf32, #tpu.memory_space<vmem>>, %arg12: memref<1x1x128xf32, #tpu.memory_space<vmem>>, %arg13: memref<1x128x128xf32, #tpu.memory_space<vmem>>, %arg14: memref<1x128xf32, #tpu.memory_space<vmem>>, %arg15: memref<1x128xf32, #tpu.memory_space<vmem>>, %arg16: memref<1x128xf32, #tpu.memory_space<vmem>>, %arg17: memref<1x8x128xf32, #tpu.memory_space<vmem>>, %arg18: memref<1x8x256xf32, #tpu.memory_space<vmem>>, %arg19: memref<1x8x128xf32, #tpu.memory_space<vmem>>) attributes {dimension_semantics = [#tpu.dimension_semantics<parallel>], iteration_bounds = array<i64: 2>, scalar_prefetch = 0 : i64, scratch_operands = 2 : i64, tpu.core_type = #tpu.core_type<tc>, window_params = [{transform_indices = @transform_0, window_bounds = array<i64: 1, 8, 128>}, {transform_indices = @transform_1, window_bounds = array<i64: 1, 8, 8>}, {transform_indices = @transform_2, window_bounds = array<i64: 1, 8, 8>}, {transform_indices = @transform_3, window_bounds = array<i64: 1, 8, 1>}, {transform_indices = @transform_4, window_bounds = array<i64: 1, 8, 1>}, {pipeline_mode = #tpu.pipeline_mode<synchronous>, transform_indices = @transform_5, window_bounds = array<i64: 128, 256>}, {pipeline_mode = #tpu.pipeline_mode<synchronous>, transform_indices = @transform_6, window_bounds = array<i64: 1, 256>}, {pipeline_mode = #tpu.pipeline_mode<synchronous>, transform_indices = @transform_7, window_bounds = array<i64: 1, 128>}, {pipeline_mode = #tpu.pipeline_mode<synchronous>, transform_indices = @transform_8, window_bounds = array<i64: 1, 128>}, {pipeline_mode = #tpu.pipeline_mode<synchronous>, transform_indices = @transform_9, window_bounds = array<i64: 1, 128>}, {pipeline_mode = #tpu.pipeline_mode<synchronous>, transform_indices = @transform_10, window_bounds = array<i64: 1, 128, 128>}, {pipeline_mode = #tpu.pipeline_mode<synchronous>, transform_indices = @transform_11, window_bounds = array<i64: 1, 1, 128>}, {pipeline_mode = #tpu.pipeline_mode<synchronous>, transform_indices = @transform_12, window_bounds = array<i64: 1, 128, 128>}, {pipeline_mode = #tpu.pipeline_mode<synchronous>, transform_indices = @transform_13, window_bounds = array<i64: 1, 128>}, {pipeline_mode = #tpu.pipeline_mode<synchronous>, transform_indices = @transform_14, window_bounds = array<i64: 1, 128>}, {pipeline_mode = #tpu.pipeline_mode<synchronous>, transform_indices = @transform_15, window_bounds = array<i64: 1, 128>}, {transform_indices = @transform_16, window_bounds = array<i64: 1, 8, 128>}]} {
    %c0 = arith.constant 0 : index
    %c0_0 = arith.constant 0 : index
    %c0_1 = arith.constant 0 : index
    %0 = vector.load %arg1[%c0, %c0_0, %c0_1] : memref<1x8x128xf32, #tpu.memory_space<vmem>>, vector<1x8x128xf32>
    %1 = vector.shape_cast %0 : vector<1x8x128xf32> to vector<8x128xf32>
    %c0_2 = arith.constant 0 : index
    %c0_3 = arith.constant 0 : index
    %2 = vector.load %arg6[%c0_2, %c0_3] : memref<128x256xf32, #tpu.memory_space<vmem>>, vector<128x256xf32>
    %cst = arith.constant dense<0.000000e+00> : vector<8x256xf32>
    %3 = tpu.matmul %1, %2, %cst {dimension_numbers = #tpu.dot_dimension_numbers<[1], [0], [0], [1], [0, 0, 1, 1], [], []>} : vector<8x128xf32>, vector<128x256xf32>, vector<8x256xf32> -> vector<8x256xf32>
    %c0_4 = arith.constant 0 : index
    %c0_5 = arith.constant 0 : index
    %4 = vector.load %arg7[%c0_4, %c0_5] : memref<1x256xf32, #tpu.memory_space<vmem>>, vector<1x256xf32>
    %5 = vector.broadcast %4 : vector<1x256xf32> to vector<8x256xf32>
    %6 = arith.addf %3, %5 : vector<8x256xf32>
    %7 = vector.shape_cast %6 : vector<8x256xf32> to vector<1x8x256xf32>
    %c0_6 = arith.constant 0 : index
    %c0_7 = arith.constant 0 : index
    %c0_8 = arith.constant 0 : index
    %8 = vector.load %arg18[%c0_6, %c0_7, %c0_8] : memref<1x8x256xf32, #tpu.memory_space<vmem>>, vector<1x8x256xf32>
    tpu.vector_store %arg18[%c0_6, %c0_7, %c0_8], %7 {strides = array<i32>} : memref<1x8x256xf32, #tpu.memory_space<vmem>>, vector<1x8x256xf32>,
    %c0_i32 = arith.constant 0 : i32
    %9 = arith.index_cast %c0_i32 : i32 to index
    %c0_9 = arith.constant 0 : index
    %c0_10 = arith.constant 0 : index
    %10 = vector.load %arg4[%9, %c0_9, %c0_10] : memref<1x8x1xf32, #tpu.memory_space<vmem>>, vector<1x8x1xf32>
    %11 = vector.shape_cast %10 : vector<1x8x1xf32> to vector<8x1xf32>
    %12 = arith.index_cast %c0_i32 : i32 to index
    %c0_11 = arith.constant 0 : index
    %c0_12 = arith.constant 0 : index
    %13 = vector.load %arg2[%12, %c0_11, %c0_12] : memref<1x8x8xf32, #tpu.memory_space<vmem>>, vector<1x8x8xf32>
    %14 = vector.shape_cast %13 : vector<1x8x8xf32> to vector<8x8xf32>
    %15 = arith.index_cast %c0_i32 : i32 to index
    %c0_13 = arith.constant 0 : index
    %c0_14 = arith.constant 0 : index
    %16 = vector.load %arg18[%15, %c0_13, %c0_14] : memref<1x8x256xf32, #tpu.memory_space<vmem>>, vector<1x8x128xf32>
    %17 = vector.shape_cast %16 : vector<1x8x128xf32> to vector<8x128xf32>
    %cst_15 = arith.constant dense<0.000000e+00> : vector<8x128xf32>
    %18 = tpu.matmul %14, %17, %cst_15 {dimension_numbers = #tpu.dot_dimension_numbers<[1], [0], [0], [1], [0, 0, 1, 1], [], []>} : vector<8x8xf32>, vector<8x128xf32>, vector<8x128xf32> -> vector<8x128xf32>
    %19 = vector.broadcast %11 : vector<8x1xf32> to vector<8x128xf32>
    %20 = arith.mulf %19, %18 : vector<8x128xf32>
    %21 = arith.index_cast %c0_i32 : i32 to index
    %c0_16 = arith.constant 0 : index
    %c0_17 = arith.constant 0 : index
    %22 = vector.load %arg5[%21, %c0_16, %c0_17] : memref<1x8x1xf32, #tpu.memory_space<vmem>>, vector<1x8x1xf32>
    %23 = vector.shape_cast %22 : vector<1x8x1xf32> to vector<8x1xf32>
    %24 = arith.index_cast %c0_i32 : i32 to index
    %c0_18 = arith.constant 0 : index
    %c0_19 = arith.constant 0 : index
    %25 = vector.load %arg3[%24, %c0_18, %c0_19] : memref<1x8x8xf32, #tpu.memory_space<vmem>>, vector<1x8x8xf32>
    %26 = vector.shape_cast %25 : vector<1x8x8xf32> to vector<8x8xf32>
    %27 = arith.index_cast %c0_i32 : i32 to index
    %c0_20 = arith.constant 0 : index
    %c128 = arith.constant 128 : index
    %28 = vector.load %arg18[%27, %c0_20, %c128] : memref<1x8x256xf32, #tpu.memory_space<vmem>>, vector<1x8x128xf32>
    %29 = vector.shape_cast %28 : vector<1x8x128xf32> to vector<8x128xf32>
    %cst_21 = arith.constant dense<0.000000e+00> : vector<8x128xf32>
    %30 = tpu.matmul %26, %29, %cst_21 {dimension_numbers = #tpu.dot_dimension_numbers<[1], [0], [0], [1], [0, 0, 1, 1], [], []>} : vector<8x8xf32>, vector<8x128xf32>, vector<8x128xf32> -> vector<8x128xf32>
    %31 = vector.broadcast %23 : vector<8x1xf32> to vector<8x128xf32>
    %32 = arith.mulf %31, %30 : vector<8x128xf32>
    %33 = arith.addf %20, %32 : vector<8x128xf32>
    %34 = arith.index_cast %c0_i32 : i32 to index
    %c0_22 = arith.constant 0 : index
    %c0_23 = arith.constant 0 : index
    %35 = vector.load %arg19[%34, %c0_22, %c0_23] : memref<1x8x128xf32, #tpu.memory_space<vmem>>, vector<1x8x128xf32>
    %36 = vector.shape_cast %35 : vector<1x8x128xf32> to vector<8x128xf32>
    %37 = vector.shape_cast %33 : vector<8x128xf32> to vector<1x8x128xf32>
    tpu.vector_store %arg19[%34, %c0_22, %c0_23], %37 {strides = array<i32>} : memref<1x8x128xf32, #tpu.memory_space<vmem>>, vector<1x8x128xf32>,
    %c1_i32 = arith.constant 1 : i32
    %c0_24 = arith.constant 0 : index
    %c0_25 = arith.constant 0 : index
    %c0_26 = arith.constant 0 : index
    %38 = vector.load %arg19[%c0_24, %c0_25, %c0_26] : memref<1x8x128xf32, #tpu.memory_space<vmem>>, vector<1x8x128xf32>
    %39 = vector.shape_cast %38 : vector<1x8x128xf32> to vector<8x128xf32>
    %c0_27 = arith.constant 0 : index
    %c0_28 = arith.constant 0 : index
    %40 = vector.load %arg8[%c0_27, %c0_28] : memref<1x128xf32, #tpu.memory_space<vmem>>, vector<1x128xf32>
    %41 = vector.broadcast %40 : vector<1x128xf32> to vector<8x128xf32>
    %42 = arith.addf %39, %41 : vector<8x128xf32>
    %c0_29 = arith.constant 0 : index
    %c0_30 = arith.constant 0 : index
    %43 = vector.load %arg9[%c0_29, %c0_30] : memref<1x128xf32, #tpu.memory_space<vmem>>, vector<1x128xf32>
    %c0_31 = arith.constant 0 : index
    %c0_32 = arith.constant 0 : index
    %44 = vector.load %arg10[%c0_31, %c0_32] : memref<1x128xf32, #tpu.memory_space<vmem>>, vector<1x128xf32>
    %cst_33 = arith.constant dense<0.000000e+00> : vector<8xf32>
    %45 = vector.multi_reduction <add>, %42, %cst_33 [1] : vector<8x128xf32> to vector<8xf32>
    %46 = vector.shape_cast %45 : vector<8xf32> to vector<8x1xf32>
    %cst_34 = arith.constant 3.125000e-02 : f32
    %47 = vector.broadcast %cst_34 : f32 to vector<8x1xf32>
    %48 = arith.mulf %46, %47 : vector<8x1xf32>
    %49 = vector.broadcast %48 : vector<8x1xf32> to vector<8x128xf32>
    %50 = arith.subf %42, %49 : vector<8x128xf32>
    %51 = arith.mulf %50, %50 : vector<8x128xf32>
    %cst_35 = arith.constant dense<0.000000e+00> : vector<8xf32>
    %52 = vector.multi_reduction <add>, %51, %cst_35 [1] : vector<8x128xf32> to vector<8xf32>
    %53 = vector.shape_cast %52 : vector<8xf32> to vector<8x1xf32>
    %54 = arith.mulf %48, %48 : vector<8x1xf32>
    %cst_36 = arith.constant 9.600000e+01 : f32
    %55 = vector.broadcast %cst_36 : f32 to vector<8x1xf32>
    %56 = arith.mulf %55, %54 : vector<8x1xf32>
    %57 = arith.subf %53, %56 : vector<8x1xf32>
    %cst_37 = arith.constant 3.125000e-02 : f32
    %58 = vector.broadcast %cst_37 : f32 to vector<8x1xf32>
    %59 = arith.mulf %57, %58 : vector<8x1xf32>
    %cst_38 = arith.constant 0.000000e+00 : f32
    %60 = vector.broadcast %cst_38 : f32 to vector<8x1xf32>
    %61 = arith.maximumf %59, %60 : vector<8x1xf32>
    %cst_39 = arith.constant 9.99999974E-6 : f32
    %62 = vector.broadcast %cst_39 : f32 to vector<8x1xf32>
    %63 = arith.addf %61, %62 : vector<8x1xf32>
    %64 = math.rsqrt %63 : vector<8x1xf32>
    %65 = vector.broadcast %64 : vector<8x1xf32> to vector<8x128xf32>
    %66 = arith.mulf %50, %65 : vector<8x128xf32>
    %67 = vector.broadcast %43 : vector<1x128xf32> to vector<8x128xf32>
    %68 = arith.mulf %66, %67 : vector<8x128xf32>
    %69 = vector.broadcast %44 : vector<1x128xf32> to vector<8x128xf32>
    %70 = arith.addf %68, %69 : vector<8x128xf32>
    %cst_40 = arith.constant 0.000000e+00 : f32
    %71 = vector.broadcast %cst_40 : f32 to vector<8x128xf32>
    %72 = arith.maximumf %70, %71 : vector<8x128xf32>
    %73 = arith.addf %72, %1 : vector<8x128xf32>
    %cst_41 = arith.constant 0.000000e+00 : f32
    %74 = vector.broadcast %cst_41 : f32 to vector<8x128xf32>
    %c0_i32_42 = arith.constant 0 : i32
    %75 = arith.index_cast %c0_i32_42 : i32 to index
    %c0_43 = arith.constant 0 : index
    %c0_44 = arith.constant 0 : index
    %76 = vector.load %arg11[%75, %c0_43, %c0_44] : memref<1x128x128xf32, #tpu.memory_space<vmem>>, vector<1x128x128xf32>
    %77 = vector.shape_cast %76 : vector<1x128x128xf32> to vector<128x128xf32>
    %cst_45 = arith.constant dense<0.000000e+00> : vector<8x128xf32>
    %78 = tpu.matmul %73, %77, %cst_45 {dimension_numbers = #tpu.dot_dimension_numbers<[1], [0], [0], [1], [0, 0, 1, 1], [], []>} : vector<8x128xf32>, vector<128x128xf32>, vector<8x128xf32> -> vector<8x128xf32>
    %79 = arith.index_cast %c0_i32_42 : i32 to index
    %c0_46 = arith.constant 0 : index
    %c0_47 = arith.constant 0 : index
    %80 = vector.load %arg12[%79, %c0_46, %c0_47] : memref<1x1x128xf32, #tpu.memory_space<vmem>>, vector<1x1x128xf32>
    %81 = vector.shape_cast %80 : vector<1x1x128xf32> to vector<1x128xf32>
    %82 = vector.broadcast %81 : vector<1x128xf32> to vector<8x128xf32>
    %83 = arith.addf %78, %82 : vector<8x128xf32>
    %cst_48 = arith.constant 0.000000e+00 : f32
    %84 = vector.broadcast %cst_48 : f32 to vector<8x128xf32>
    %85 = arith.maximumf %83, %84 : vector<8x128xf32>
    %86 = arith.index_cast %c0_i32_42 : i32 to index
    %c0_49 = arith.constant 0 : index
    %c0_50 = arith.constant 0 : index
    %87 = vector.load %arg13[%86, %c0_49, %c0_50] : memref<1x128x128xf32, #tpu.memory_space<vmem>>, vector<1x128x128xf32>
    %88 = vector.shape_cast %87 : vector<1x128x128xf32> to vector<128x128xf32>
    %cst_51 = arith.constant dense<0.000000e+00> : vector<8x128xf32>
    %89 = tpu.matmul %85, %88, %cst_51 {dimension_numbers = #tpu.dot_dimension_numbers<[1], [0], [0], [1], [0, 0, 1, 1], [], []>} : vector<8x128xf32>, vector<128x128xf32>, vector<8x128xf32> -> vector<8x128xf32>
    %90 = arith.addf %74, %89 : vector<8x128xf32>
    %c1_i32_52 = arith.constant 1 : i32
    %c0_53 = arith.constant 0 : index
    %c0_54 = arith.constant 0 : index
    %91 = vector.load %arg14[%c0_53, %c0_54] : memref<1x128xf32, #tpu.memory_space<vmem>>, vector<1x128xf32>
    %92 = vector.broadcast %91 : vector<1x128xf32> to vector<8x128xf32>
    %93 = arith.addf %90, %92 : vector<8x128xf32>
    %94 = arith.addf %93, %73 : vector<8x128xf32>
    %c0_55 = arith.constant 0 : index
    %c0_56 = arith.constant 0 : index
    %95 = vector.load %arg15[%c0_55, %c0_56] : memref<1x128xf32, #tpu.memory_space<vmem>>, vector<1x128xf32>
    %c0_57 = arith.constant 0 : index
    %c0_58 = arith.constant 0 : index
    %96 = vector.load %arg16[%c0_57, %c0_58] : memref<1x128xf32, #tpu.memory_space<vmem>>, vector<1x128xf32>
    %cst_59 = arith.constant dense<0.000000e+00> : vector<8xf32>
    %97 = vector.multi_reduction <add>, %94, %cst_59 [1] : vector<8x128xf32> to vector<8xf32>
    %98 = vector.shape_cast %97 : vector<8xf32> to vector<8x1xf32>
    %cst_60 = arith.constant 3.125000e-02 : f32
    %99 = vector.broadcast %cst_60 : f32 to vector<8x1xf32>
    %100 = arith.mulf %98, %99 : vector<8x1xf32>
    %101 = vector.broadcast %100 : vector<8x1xf32> to vector<8x128xf32>
    %102 = arith.subf %94, %101 : vector<8x128xf32>
    %103 = arith.mulf %102, %102 : vector<8x128xf32>
    %cst_61 = arith.constant dense<0.000000e+00> : vector<8xf32>
    %104 = vector.multi_reduction <add>, %103, %cst_61 [1] : vector<8x128xf32> to vector<8xf32>
    %105 = vector.shape_cast %104 : vector<8xf32> to vector<8x1xf32>
    %106 = arith.mulf %100, %100 : vector<8x1xf32>
    %cst_62 = arith.constant 9.600000e+01 : f32
    %107 = vector.broadcast %cst_62 : f32 to vector<8x1xf32>
    %108 = arith.mulf %107, %106 : vector<8x1xf32>
    %109 = arith.subf %105, %108 : vector<8x1xf32>
    %cst_63 = arith.constant 3.125000e-02 : f32
    %110 = vector.broadcast %cst_63 : f32 to vector<8x1xf32>
    %111 = arith.mulf %109, %110 : vector<8x1xf32>
    %cst_64 = arith.constant 0.000000e+00 : f32
    %112 = vector.broadcast %cst_64 : f32 to vector<8x1xf32>
    %113 = arith.maximumf %111, %112 : vector<8x1xf32>
    %cst_65 = arith.constant 9.99999974E-6 : f32
    %114 = vector.broadcast %cst_65 : f32 to vector<8x1xf32>
    %115 = arith.addf %113, %114 : vector<8x1xf32>
    %116 = math.rsqrt %115 : vector<8x1xf32>
    %117 = vector.broadcast %116 : vector<8x1xf32> to vector<8x128xf32>
    %118 = arith.mulf %102, %117 : vector<8x128xf32>
    %119 = vector.broadcast %95 : vector<1x128xf32> to vector<8x128xf32>
    %120 = arith.mulf %118, %119 : vector<8x128xf32>
    %121 = vector.broadcast %96 : vector<1x128xf32> to vector<8x128xf32>
    %122 = arith.addf %120, %121 : vector<8x128xf32>
    %123 = vector.shape_cast %122 : vector<8x128xf32> to vector<1x8x128xf32>
    %c0_66 = arith.constant 0 : index
    %c0_67 = arith.constant 0 : index
    %c0_68 = arith.constant 0 : index
    %124 = vector.load %arg17[%c0_66, %c0_67, %c0_68] : memref<1x8x128xf32, #tpu.memory_space<vmem>>, vector<1x8x128xf32>
    tpu.vector_store %arg17[%c0_66, %c0_67, %c0_68], %123 {strides = array<i32>} : memref<1x8x128xf32, #tpu.memory_space<vmem>>, vector<1x8x128xf32>,
    return
  }
  func.func @transform_0(%arg0: i32) -> (i32, i32, i32) {
    %c0_i32 = arith.constant 0 : i32
    %c0_i32_0 = arith.constant 0 : i32
    %c0_i32_1 = arith.constant 0 : i32
    return %arg0, %c0_i32, %c0_i32_0 : i32, i32, i32
  }
  func.func @transform_1(%arg0: i32) -> (i32, i32, i32) {
    %c0_i32 = arith.constant 0 : i32
    %c0_i32_0 = arith.constant 0 : i32
    %c0_i32_1 = arith.constant 0 : i32
    return %arg0, %c0_i32, %c0_i32_0 : i32, i32, i32
  }
  func.func @transform_2(%arg0: i32) -> (i32, i32, i32) {
    %c0_i32 = arith.constant 0 : i32
    %c0_i32_0 = arith.constant 0 : i32
    %c0_i32_1 = arith.constant 0 : i32
    return %arg0, %c0_i32, %c0_i32_0 : i32, i32, i32
  }
  func.func @transform_3(%arg0: i32) -> (i32, i32, i32) {
    %c0_i32 = arith.constant 0 : i32
    %c0_i32_0 = arith.constant 0 : i32
    %c0_i32_1 = arith.constant 0 : i32
    return %arg0, %c0_i32, %c0_i32_0 : i32, i32, i32
  }
  func.func @transform_4(%arg0: i32) -> (i32, i32, i32) {
    %c0_i32 = arith.constant 0 : i32
    %c0_i32_0 = arith.constant 0 : i32
    %c0_i32_1 = arith.constant 0 : i32
    return %arg0, %c0_i32, %c0_i32_0 : i32, i32, i32
  }
  func.func @transform_5(%arg0: i32) -> (i32, i32) {
    %c0_i32 = arith.constant 0 : i32
    %c0_i32_0 = arith.constant 0 : i32
    %c0_i32_1 = arith.constant 0 : i32
    return %c0_i32, %c0_i32_0 : i32, i32
  }
  func.func @transform_6(%arg0: i32) -> (i32, i32) {
    %c0_i32 = arith.constant 0 : i32
    %c0_i32_0 = arith.constant 0 : i32
    %c0_i32_1 = arith.constant 0 : i32
    return %c0_i32, %c0_i32_0 : i32, i32
  }
  func.func @transform_7(%arg0: i32) -> (i32, i32) {
    %c0_i32 = arith.constant 0 : i32
    %c0_i32_0 = arith.constant 0 : i32
    %c0_i32_1 = arith.constant 0 : i32
    return %c0_i32, %c0_i32_0 : i32, i32
  }
  func.func @transform_8(%arg0: i32) -> (i32, i32) {
    %c0_i32 = arith.constant 0 : i32
    %c0_i32_0 = arith.constant 0 : i32
    %c0_i32_1 = arith.constant 0 : i32
    return %c0_i32, %c0_i32_0 : i32, i32
  }
  func.func @transform_9(%arg0: i32) -> (i32, i32) {
    %c0_i32 = arith.constant 0 : i32
    %c0_i32_0 = arith.constant 0 : i32
    %c0_i32_1 = arith.constant 0 : i32
    return %c0_i32, %c0_i32_0 : i32, i32
  }
  func.func @transform_10(%arg0: i32) -> (i32, i32, i32) {
    %c0_i32 = arith.constant 0 : i32
    %c0_i32_0 = arith.constant 0 : i32
    %c0_i32_1 = arith.constant 0 : i32
    %c0_i32_2 = arith.constant 0 : i32
    return %c0_i32, %c0_i32_0, %c0_i32_1 : i32, i32, i32
  }
  func.func @transform_11(%arg0: i32) -> (i32, i32, i32) {
    %c0_i32 = arith.constant 0 : i32
    %c0_i32_0 = arith.constant 0 : i32
    %c0_i32_1 = arith.constant 0 : i32
    %c0_i32_2 = arith.constant 0 : i32
    return %c0_i32, %c0_i32_0, %c0_i32_1 : i32, i32, i32
  }
  func.func @transform_12(%arg0: i32) -> (i32, i32, i32) {
    %c0_i32 = arith.constant 0 : i32
    %c0_i32_0 = arith.constant 0 : i32
    %c0_i32_1 = arith.constant 0 : i32
    %c0_i32_2 = arith.constant 0 : i32
    return %c0_i32, %c0_i32_0, %c0_i32_1 : i32, i32, i32
  }
  func.func @transform_13(%arg0: i32) -> (i32, i32) {
    %c0_i32 = arith.constant 0 : i32
    %c0_i32_0 = arith.constant 0 : i32
    %c0_i32_1 = arith.constant 0 : i32
    return %c0_i32, %c0_i32_0 : i32, i32
  }
  func.func @transform_14(%arg0: i32) -> (i32, i32) {
    %c0_i32 = arith.constant 0 : i32
    %c0_i32_0 = arith.constant 0 : i32
    %c0_i32_1 = arith.constant 0 : i32
    return %c0_i32, %c0_i32_0 : i32, i32
  }
  func.func @transform_15(%arg0: i32) -> (i32, i32) {
    %c0_i32 = arith.constant 0 : i32
    %c0_i32_0 = arith.constant 0 : i32
    %c0_i32_1 = arith.constant 0 : i32
    return %c0_i32, %c0_i32_0 : i32, i32
  }
  func.func @transform_16(%arg0: i32) -> (i32, i32, i32) {
    %c0_i32 = arith.constant 0 : i32
    %c0_i32_0 = arith.constant 0 : i32
    %c0_i32_1 = arith.constant 0 : i32
    return %arg0, %c0_i32, %c0_i32_0 : i32, i32, i32
  }
}

</mosaic_0001>

<bundles_post_ra>
// kernel: tpu_custom_call.1
= control target key start
LH: loop header
LB: loop body
LE: loop exit
PB: predicated region body
PF: predicated region fallthrough
CT: control target
= control target key end

     0   :  { %s2307_s0 = inlined_call_operand.vmem [shape: f32[2,8,128], index: 0, kind: input, shape index: {}]   ;;  %s2308_s1 = inlined_call_operand.vmem [shape: f32[2,8,8], index: 1, kind: input, shape index: {}]   ;;  %s2309_s2 = inlined_call_operand.hbm [shape: f32[2,8,8], index: 2, kind: input, shape index: {}]   ;;  %s2310_s3 = inlined_call_operand.vmem [shape: f32[2,8,1], index: 3, kind: input, shape index: {}]   ;;  %s2311_s4 = inlined_call_operand.vmem [shape: f32[2,8,1], index: 4, kind: input, shape index: {}]   ;;  %s2312_s5 = inlined_call_operand.hbm [shape: f32[128,256], index: 5, kind: input, shape index: {}]   ;;  %s2313_s6 = inlined_call_operand.vmem [shape: f32[1,256], index: 6, kind: input, shape index: {}]   ;;  %s2314_s7 = inlined_call_operand.vmem [shape: f32[1,128], index: 7, kind: input, shape index: {}]   ;;  %s2315_s8 = inlined_call_operand.vmem [shape: f32[1,128], index: 8, kind: input, shape index: {}]   ;;  %s2316_s9 = inlined_call_operand.vmem [shape: f32[1,128], index: 9, kind: input, shape index: {}]   ;;  %s2317_s10 = inlined_call_operand.hbm [shape: f32[1,128,128], index: 10, kind: input, shape index: {}]   ;;  %s2318_s11 = inlined_call_operand.vmem [shape: f32[1,1,128], index: 11, kind: input, shape index: {}]   ;;  %s2319_s12 = inlined_call_operand.hbm [shape: f32[1,128,128], index: 12, kind: input, shape index: {}]   ;;  %s2320_s13 = inlined_call_operand.vmem [shape: f32[1,128], index: 13, kind: input, shape index: {}]   ;;  %s2321_s14 = inlined_call_operand.vmem [shape: f32[1,128], index: 14, kind: input, shape index: {}]   ;;  %s2322_s15 = inlined_call_operand.vmem [shape: f32[1,128], index: 15, kind: input, shape index: {}]   ;;  %s2323_s16 = inlined_call_operand.hbm [shape: f32[2,8,128], index: 16, kind: output, shape index: {}]  }
   0x1   :  { %2330 = sst [smem:[#allocation19_spill]] %s2307_s0 }
   0x2   :  { %2331 = sst [smem:[#allocation20_spill]] %s2312_s5 }
   0x3   :  { %2332 = sst [smem:[#allocation21_spill]] %s2315_s8 }
   0x4   :  { %2333 = sst [smem:[#allocation22_spill]] %s2316_s9 }
   0x5   :  { %2334 = sst [smem:[#allocation23_spill]] %s2318_s11 }
   0x6   :  { %2335 = sst [smem:[#allocation24_spill]] %s2320_s13 }
   0x7   :  { %2336 = sst [smem:[#allocation25_spill]] %s2321_s14 }
   0x8   :  { %2337 = sst [smem:[#allocation26_spill]] %s2322_s15 }
   0x9   :  { %2338 = sst [smem:[#allocation27_spill]] %s2323_s16 }
   0xa   :  { %21 = vsyncpa [#allocation5], 0 }
   0xb   :  { %23 = vsyncpa [#allocation5 + $0x1], 0 }
   0xc   :  { %24 = vsyncpa [#allocation8], 0 }
   0xd   :  { %25 = vsyncpa [#allocation11], 0 }
   0xe   :  { %26 = vsyncpa [#allocation6], 0 }
   0xf   :  { %28 = vsyncpa [#allocation6 + $0x1], 0  ;;  %s1964_s21 = smov 0   ;;  %s1966_s22 = smov 0  }
  0x10   :  { %s1968_s23 = smov 0   ;;  %s1970_s24 = smov 0  }
  0x11 LB: > { %2339 = sst [smem:[#allocation17_spill]] %s1852_s21  ;;  %s1985_s25 = sadd.s32 4294967295, %s1864_s24   ;;  %s1864_s24 = sphi %s1970_s24, %s2371_s24   ;;  %s1860_s23 = sphi %s1968_s23, %s2370_s23   ;;  %s1856_s22 = sphi %s1966_s22, %s2369_s22   ;;  %s1852_s21 = sphi %s1964_s21, %s2368_s21  }
  0x12   : > { %s1357_s26 = sadd.s32 4294967294, %s1864_s24   ;;  %p106_p0 = scmp.ne.s32.totalorder %s1856_s22, %s1852_s21 }
  0x13   : > { %p2327_p1 = scmp.eq.s32.totalorder %s1985_s25, 0  ;;  %p419_p3 = scmp.eq.s32.totalorder %s1357_s26, 1 }
  0x14   : > { %p1358_p5 = scmp.ge.s32.totalorder %s1864_s24, 1  ;;  %p426_p7 = scmp.lt.s32.totalorder %s1864_s24, 3 }
  0x15   : > { %p1994_p4 = por %p2327_p1, %p106_p0  ;;  %p1999_p6 = por %p419_p3, %p106_p0 }
  0x16   : > { %p2004_p8 = pnand %p1358_p5, %p426_p7  ;;  %s1866_s30 = smov [#allocation7]  }
  0x17   : > { %s2340_s27 = scalar_select %p1994_p4, 1, 0 }
  0x18   : > { %s2341_s28 = scalar_select %p1999_p6, 1, 0 }
  0x19   : > { %s2343_s29 = scalar_select %p2004_p8, 1, 0 }
  0x1a   : > { %2342 = sst [smem:[#allocation18_spill]] %s2341_s28  ;;  %s438_s0 = sshll.u32 %s1866_s30, 4  ;;  %s2008_s0 = int_to_ptr.vmem [resolvable:$true] %s438_s0 }
  0x1b   : > { %p1602_p9 = pneg %p2004_p8  ;;  %s1867_s18 = smov [#allocation9]  }
  0x1c   : > { %s463_s19 = sshll.u32 %s1867_s18, 4  ;;  %s2345_s5 = sld [smem:[#allocation20_spill]]  ;;  %s2019_s19 = int_to_ptr.vmem [resolvable:$true] %s463_s19 }
  0x1d   : > { %p2015_p11 = pnand %p1602_p9, %p2327_p1 }
  0x1f   : > { %p2029_p13 = pneg %p2015_p11 }
  0x22   : > { %s1676_s28 = scalar_lea.hbm %s2345_s5, 4096 }
  0x23   : > { %p1677_p12 = scmp.ne.s32.totalorder %s2345_s5, %s1676_s28  ;;  %p1683_p5 = scmp.lt.u32.totalorder %s1676_s28, %s2345_s5 }
  0x25   : > { %p1679_p0 = pnand %p2029_p13, %p1677_p12 }
  0x27   : > { %p1680_p3 = pneg %p1679_p0 }
  0x29   : > { %p1685_p7 = pnand %p1683_p5, %p1680_p3 }
  0x2b   : > { %1688 = shalt.err (!%p1685_p7)
}
  0x2c   : > { %s1689_s21 = scalar_lea.vmem %s2008_s0, 4096  ;;  %p1697_p2 = scmp.lt.s32.totalorder %s2008_s0, %s2008_s0 }
  0x2d   : > { %p1690_p9 = scmp.ne.s32.totalorder %s2008_s0, %s1689_s21  ;;  %p1698_p6 = scmp.lt.s32.totalorder %s1689_s21, %s1689_s21 }
  0x2f   : > { %p1692_p10 = pnand %p1690_p9, %p2029_p13  ;;  %p1699_p12 = por %p1698_p6, %p1697_p2 }
  0x31   : > { %p1693_p1 = pneg %p1692_p10 }
  0x33   : > { %p1700_p0 = pnand %p1699_p12, %p1693_p1 }
  0x35   : > { %1703 = shalt.err (!%p1700_p0)
}
  0x36   : > { %s1868_s20 = smov 256   ;;  %s1869_s15 = smov 16  }
  0x37   : > { %1605 = dma.hbm_to_vmem [thread:$0]  (!%p2015_p11), %s2345_s5, 4096, %s2008_s0, [#allocation8], %s1868_s20, %s1868_s20, %s1869_s15  }
  0x38   : > { %s1704_s14 = scalar_lea.hbm %s2317_s10, 2048 }
  0x39   : > { %p1705_p2 = scmp.ne.s32.totalorder %s2317_s10, %s1704_s14  ;;  %p1711_p10 = scmp.lt.u32.totalorder %s1704_s14, %s2317_s10 }
  0x3b   : > { %p1707_p1 = pnand %p1705_p2, %p2029_p13 }
  0x3d   : > { %p1708_p6 = pneg %p1707_p1 }
  0x3f   : > { %p1713_p3 = pnand %p1711_p10, %p1708_p6 }
  0x41   : > { %1716 = shalt.err (!%p1713_p3)
}
  0x42   : > { %s1717_s0 = scalar_lea.vmem %s2019_s19, 2048  ;;  %p1725_p12 = scmp.lt.s32.totalorder %s2019_s19, %s2019_s19 }
  0x43   : > { %p1718_p5 = scmp.ne.s32.totalorder %s2019_s19, %s1717_s0  ;;  %p1726_p0 = scmp.lt.s32.totalorder %s1717_s0, %s1717_s0 }
  0x45   : > { %p1720_p7 = pnand %p1718_p5, %p2029_p13  ;;  %p1727_p2 = por %p1726_p0, %p1725_p12 }
  0x47   : > { %p1721_p9 = pneg %p1720_p7 }
  0x49   : > { %p1728_p1 = pnand %p1727_p2, %p1721_p9 }
  0x4b   : > { %1731 = shalt.err (!%p1728_p1)
}
  0x4c   : > { %s1870_s11 = smov 128   ;;  %s1871_s9 = smov 8  }
  0x4d   : > { %1608 = dma.hbm_to_vmem [thread:$0]  (!%p2015_p11), %s2317_s10, 2048, %s2019_s19, [#allocation8], %s1870_s11, %s1870_s11, %s1871_s9  }
  0x4e   : > { %s1872_s20 = smov [#allocation10]   ;;  %s2074_s28 = sadd.s32 1, %s1864_s24  }
  0x4f   : > { %s479_s15 = sshll.u32 %s1872_s20, 4  ;;  %s1732_s18 = scalar_lea.hbm %s2319_s12, 2048  ;;  %s480_s15 = int_to_ptr.vmem [resolvable:$true] %s479_s15 }
  0x50   : > { %p1733_p6 = scmp.ne.s32.totalorder %s2319_s12, %s1732_s18  ;;  %p1739_p5 = scmp.lt.u32.totalorder %s1732_s18, %s2319_s12 }
  0x52   : > { %p1735_p10 = pnand %p1733_p6, %p2029_p13 }
  0x54   : > { %p1736_p3 = pneg %p1735_p10 }
  0x56   : > { %p1741_p7 = pnand %p1739_p5, %p1736_p3 }
  0x58   : > { %1744 = shalt.err (!%p1741_p7)
}
  0x59   : > { %s1745_s19 = scalar_lea.vmem %s480_s15, 2048  ;;  %p1753_p2 = scmp.lt.s32.totalorder %s480_s15, %s480_s15 }
  0x5a   : > { %p1746_p9 = scmp.ne.s32.totalorder %s480_s15, %s1745_s19  ;;  %p1754_p1 = scmp.lt.s32.totalorder %s1745_s19, %s1745_s19 }
  0x5c   : > { %p1748_p12 = pnand %p1746_p9, %p2029_p13  ;;  %p1755_p4 = por %p1754_p1, %p1753_p2 }
  0x5e   : > { %p1749_p0 = pneg %p1748_p12 }
  0x60   : > { %p1756_p8 = pnand %p1755_p4, %p1749_p0 }
  0x62   : > { %1759 = shalt.err (!%p1756_p8)
}
  0x63   : > { %1611 = dma.hbm_to_vmem [thread:$0]  (!%p2015_p11), %s2319_s12, 2048, %s480_s15, [#allocation11], %s1870_s11, %s1870_s11, %s1871_s9  }
  0x64   : > { %s90_s5 = ssub.s32 %s1864_s24, %s2074_s28  ;;  %s93_s8 = sadd.s32 1, %s1860_s23 }
  0x65   : > { %p91_p4 = scmp.eq.s32.totalorder %s90_s5, 0  ;;  %p100_p8 = scmp.ne.s32.totalorder %s1860_s23, %s1856_s22 }
  0x66   : > { %p101_p13 = scmp.eq.s32.totalorder %s1864_s24, 0  ;;  %p1623_p6 = scmp.lt.s32.totalorder %s1864_s24, 2 }
  0x67   : > { %s2102_s16 = scalar_select %p91_p4, %s1860_s23, %s93_s8  }
  0x68   : > { %p102_p10 = por %p101_p13, %p100_p8  ;;  %p2347_p3 = scmp.eq.s32.totalorder %s1985_s25, 1 }
  0x69   : > { %s516_s20 = sand.u32 1, %s1860_s23   ;;  %s1364_s26 = sshll.u32 %s1864_s24, 7 }
  0x6a   : > { %p2106_p5 = por %p2347_p3, %p100_p8  ;;  %s1363_s30 = sshll.u32 %s516_s20, 3 }
  0x6b   : > { %s2115_s11 = scalar_lea.hbm %s2309_s2, %s1364_s26  ;;  %s520_s9 = scalar_lea.vmem [#allocation4], %s1363_s30 }
  0x6c   : > { %s527_s15 = sshll.u32 %s520_s9, 4  ;;  %p2117_p11 = pnand %p1623_p6, %p102_p10  ;;  %s2121_s15 = int_to_ptr.vmem [resolvable:$true] %s527_s15 }
  0x6d   : > { %s517_s19 = scalar_lea.sflag [#allocation5], %s516_s20  ;;  %s1760_s13 = scalar_lea.hbm %s2115_s11, 128 }
  0x6e   : > { %p1761_p7 = scmp.ne.s32.totalorder %s2115_s11, %s1760_s13  ;;  %p1762_p9 = pneg %p2117_p11 }
  0x6f   : > { %s1765_s8 = scalar_lea.hbm %s2309_s2, 256  ;;  %p1766_p2 = scmp.lt.u32.totalorder %s2115_s11, %s2309_s2 }
  0x70   : > { %p1763_p12 = pnand %p1762_p9, %p1761_p7  ;;  %p1767_p1 = scmp.lt.u32.totalorder %s1765_s8, %s1760_s13 }
  0x71   : > { %p1769_p8 = scmp.lt.u32.totalorder %s1760_s13, %s2115_s11 }
  0x72   : > { %p1764_p0 = pneg %p1763_p12  ;;  %p1768_p4 = por %p1767_p1, %p1766_p2 }
  0x74   : > { %p1770_p13 = por %p1769_p8, %p1768_p4 }
  0x76   : > { %p1771_p6 = pnand %p1770_p13, %p1764_p0 }
  0x78   : > { %1774 = shalt.err (!%p1771_p6)
}
  0x79   : > { %s1775_s20 = scalar_lea.vmem %s2121_s15, 128  ;;  %s1873_s18 = smov [#allocation4]  }
  0x7a   : > { %p1776_p10 = scmp.ne.s32.totalorder %s2121_s15, %s1775_s20  ;;  %s1780_s21 = sshll.u32 %s1873_s18, 4  ;;  %s1781_s21 = int_to_ptr.vmem [resolvable:$false] %s1780_s21 }
  0x7b   : > { %s1782_s9 = scalar_lea.vmem %s1781_s21, 256  ;;  %p1783_p12 = scmp.lt.s32.totalorder %s2121_s15, %s1781_s21 }
  0x7c   : > { %p1778_p3 = pnand %p1776_p10, %p1762_p9  ;;  %p1784_p2 = scmp.lt.s32.totalorder %s1782_s9, %s1775_s20 }
  0x7e   : > { %p1779_p7 = pneg %p1778_p3  ;;  %p1785_p1 = por %p1784_p2, %p1783_p12 }
  0x80   : > { %p1786_p4 = pnand %p1785_p1, %p1779_p7 }
  0x82   : > { %1789 = shalt.err (!%p1786_p4)
}
  0x83   : > { %1615 = dma.hbm_to_vmem [thread:$0]  (!%p2117_p11), %s2115_s11, 128, %s2121_s15, %s517_s19  }
  0x84   : > { %p2350_p0 = scmp.ne.s32.totalorder %s2343_s29, 0 }
  0x85   : > { %s2151_s13 = sand.u32 (!%p2350_p0), 1, %s1856_s22   ;;  %p2351_p9 = scmp.ne.s32.totalorder (!%p2350_p0), %s2340_s27, 0 }
  0x86   : > { %550 = sbr.rel (%p2350_p0) target bundleno = 1701 (0x6a5), region = 84  ;;  %s1366_s14 = sshll.u32 (!%p2350_p0), %s2151_s13, 3 }
  0x87   : > { %s553_s5 = scalar_lea.sflag (!%p2350_p0), [#allocation5], %s2151_s13  ;;  %s2157_s8 = scalar_lea.vmem (!%p2350_p0), [#allocation4], %s1366_s14 }
  0x8d   : > { %1835 = dma.done.wait (%p2351_p9), %s553_s5, 128  }
  0x8e   : > { %1837 = vsyncadd (%p2351_p9), %s553_s5, 4294967168  ;;  %p2352_p11 = scmp.eq.s32.totalorder %s1985_s25, 0 }
  0x90   : > { %1839 = dma.done.wait (%p2352_p11), [#allocation8], 6144   ;;  %p2353_p8 = pmov %p2352_p11 }
  0x92   : > { %1841 = vsyncadd (%p2353_p8), [#allocation8], 4294961152  ;;  %p2354_p13 = pmov %p2353_p8 }
  0x93   : > { %p2355_p6 = pmov %p2353_p8 }
  0x94   : > { %1843 = dma.done.wait (%p2354_p13), [#allocation11], 2048  }
  0x95   : > { %1845 = vsyncadd (%p2355_p6), [#allocation11], 4294965248  ;;  %v1874_v0 = vmov 0.0   ;;  %v651_v1 = vld [vmem:[#allocation7 + $0x8] sm:$0xff]  ;;  %v653_v2 = vld [vmem:[#allocation7 + $0x18] sm:$0xff]  ;;  %p633_p10 = scmp.lt.s32.totalorder %s1985_s25, 1  ;;  %v684_v53 = vlaneseq }
  0x96   : > { %758 = vmatprep.mubr.f32.mxu0 %v1874_v0  ;;  %1426 = vmatprep.subr.mxu1 %v1874_v0  ;;  %v650_v3 = vld [vmem:[#allocation7] sm:$0xff]  ;;  %v1506_v4 = vpack.c.bf16 %v653_v2, %v651_v1  ;;  %v652_v5 = vld [vmem:[#allocation7 + $0x10] sm:$0xff]  ;;  %v655_v6 = vld [vmem:[#allocation7 + $0x28] sm:$0xff]  ;;  %s2356_s0 = sld [smem:[#allocation19_spill]]  ;;  %vm1875_vm0 = vmmov 0   ;;  %v1876_v50 = vmov 0  }
  0x97   : > { %v657_v7 = vld [vmem:[#allocation7 + $0x38] sm:$0xff]  ;;  %v1508_v8 = vpack.c.bf16 %v652_v5, %v650_v3  ;;  %v654_v10 = vld [vmem:[#allocation7 + $0x20] sm:$0xff]  ;;  %v656_v11 = vld [vmem:[#allocation7 + $0x30] sm:$0xff]  ;;  %s634_s27 = scalar_select %p633_p10, %s1985_s25, 1  ;;  %1428 = vmatprep.mubr.msk.f32.mxu1 %vm1875_vm0, %v1874_v0  ;;  %1671 = vset.pattern.permute.xlu0 %v1876_v50  ;;  %v685_v54 = vshrl.u32 %v684_v53, 7  ;;  %vm770_vm1 = vcmask 64512  }
  0x98   : > { %v1510_v9 = vpack.c.bf16 %v657_v7, %v655_v6  ;;  %v659_v12 = vld [vmem:[#allocation7 + $0x48] sm:$0xff]  ;;  %1507 = vmatprep.subr.bf16.mxu0 %v1506_v4  ;;  %v661_v13 = vld [vmem:[#allocation7 + $0x58] sm:$0xff]  ;;  %v1512_v14 = vpack.c.bf16 %v656_v11, %v654_v10  ;;  %v658_v16 = vld [vmem:[#allocation7 + $0x40] sm:$0xff]  ;;  %s2357_s30 = sld [smem:[#allocation21_spill]]  ;;  %s2358_s21 = sld [smem:[#allocation22_spill]] }
  0x99   : > { %1509 = vmatpush1.bf16.msra.mxu0 %v1508_v8  ;;  %v1514_v15 = vpack.c.bf16 %v661_v13, %v659_v12  ;;  %v660_v17 = vld [vmem:[#allocation7 + $0x50] sm:$0xff]  ;;  %v663_v18 = vld [vmem:[#allocation7 + $0x68] sm:$0xff]  ;;  %v665_v19 = vld [vmem:[#allocation7 + $0x78] sm:$0xff]  ;;  %s2175_s29 = sshll.u32 %s634_s27, 3  ;;  %v686_v55 = vsub.s32 0, %v685_v54  ;;  %v690_v57 = vsub.s32 1, %v685_v54 }
  0x9a   : > { %1511 = vmatprep.subr.bf16.mxu0 %v1510_v9  ;;  %v1516_v20 = vpack.c.bf16 %v660_v17, %v658_v16  ;;  %v1518_v21 = vpack.c.bf16 %v665_v19, %v663_v18  ;;  %v662_v22 = vld [vmem:[#allocation7 + $0x60] sm:$0xff]  ;;  %v664_v23 = vld [vmem:[#allocation7 + $0x70] sm:$0xff]  ;;  %v667_v24 = vld [vmem:[#allocation7 + $0x88] sm:$0xff]  ;;  %s644_s20 = scalar_lea.vmem %s2310_s3, %s2175_s29  ;;  %s648_s9 = scalar_lea.vmem %s2311_s4, %s2175_s29  ;;  %v1877_v16 = vmov 0.0|0.0  }
  0x9b   : > { %v669_v25 = vld [vmem:[#allocation7 + $0x98] sm:$0xff]  ;;  %v1520_v26 = vpack.c.bf16 %v664_v23, %v662_v22  ;;  %v666_v28 = vld [vmem:[#allocation7 + $0x80] sm:$0xff]  ;;  %v668_v29 = vld [vmem:[#allocation7 + $0x90] sm:$0xff]  ;;  %s2359_s27 = sld [smem:[#allocation23_spill]]  ;;  %s1385_s18 = sshll.u32 %s1985_s25, 7 }
  0x9c   : > { %v1522_v27 = vpack.c.bf16 %v669_v25, %v667_v24  ;;  %v671_v30 = vld [vmem:[#allocation7 + $0xa8] sm:$0xff]  ;;  %v673_v31 = vld [vmem:[#allocation7 + $0xb8] sm:$0xff]  ;;  %v1524_v32 = vpack.c.bf16 %v668_v29, %v666_v28  ;;  %v670_v34 = vld [vmem:[#allocation7 + $0xa0] sm:$0xff]  ;;  %s636_s19 = scalar_lea.vmem %s2356_s0, %s2175_s29  ;;  %s640_s0 = scalar_lea.vmem %s2308_s1, %s2175_s29 }
  0x9d   : > { %1513 = vmatpush1.bf16.msra.mxu0 %v1512_v14  ;;  %v1526_v33 = vpack.c.bf16 %v673_v31, %v671_v30  ;;  %v672_v35 = vld [vmem:[#allocation7 + $0xb0] sm:$0xff]  ;;  %v675_v36 = vld [vmem:[#allocation7 + $0xc8] sm:$0xff]  ;;  %v677_v37 = vld [vmem:[#allocation7 + $0xd8] sm:$0xff]  ;;  %s2363_s11 = sld [smem:[#allocation27_spill]]  ;;  %s1878_s25 = smov [#allocation12]  }
  0x9e   : > { %1515 = vmatprep.subr.bf16.mxu0 %v1514_v15  ;;  %v1528_v38 = vpack.c.bf16 %v672_v35, %v670_v34  ;;  %v1530_v39 = vpack.c.bf16 %v677_v37, %v675_v36  ;;  %v674_v40 = vld [vmem:[#allocation7 + $0xc0] sm:$0xff]  ;;  %v676_v41 = vld [vmem:[#allocation7 + $0xd0] sm:$0xff]  ;;  %v679_v42 = vld [vmem:[#allocation7 + $0xe8] sm:$0xff] }
  0x9f   : > { %v681_v43 = vld [vmem:[#allocation7 + $0xf8] sm:$0xff]  ;;  %v1532_v44 = vpack.c.bf16 %v676_v41, %v674_v40  ;;  %v678_v46 = vld [vmem:[#allocation7 + $0xe0] sm:$0xff]  ;;  %v680_v47 = vld [vmem:[#allocation7 + $0xf0] sm:$0xff] }
  0xa0   : > { %v1534_v45 = vpack.c.bf16 %v681_v43, %v679_v42  ;;  %v1536_v48 = vpack.c.bf16 %v680_v47, %v678_v46  ;;  %v2181_v49 = vld [vmem:[%s636_s19] sm:$0xff]  ;;  %v976_v14 = vld [vmem:[#allocation9] sm:$0xff]  ;;  %v977_v15 = vld [vmem:[#allocation9 + $0x8] sm:$0xff] }
  0xa1   : > { %1517 = vmatpush1.bf16.msra.mxu0 %v1516_v20  ;;  %v767_v51 = vld [vmem:[%s644_s20] sm:$0xff]  ;;  %v979_v22 = vld [vmem:[#allocation9 + $0x18] sm:$0xff]  ;;  %v980_v24 = vld [vmem:[#allocation9 + $0x20] sm:$0xff]  ;;  %s2362_s20 = sld [smem:[#allocation26_spill]] }
  0xa2   : > { %1519 = vmatprep.subr.bf16.mxu0 %v1518_v21  ;;  %846 = vperm.xlu0 %1671, %v767_v51   ;;  %v850_v52 = vld [vmem:[%s648_s9] sm:$0xff]  ;;  %v981_v25 = vld [vmem:[#allocation9 + $0x28] sm:$0xff]  ;;  %v983_v28 = vld [vmem:[#allocation9 + $0x38] sm:$0xff] }
  0xa3   : > { %v682_v56 = vld [vmem:[%s2313_s6] sm:$0x3]  ;;  %v984_v30 = vld [vmem:[#allocation9 + $0x40] sm:$0xff]  ;;  %v985_v31 = vld [vmem:[#allocation9 + $0x48] sm:$0xff]  ;;  %s2263_s15 = scalar_lea.hbm %s2363_s11, %s1385_s18 }
  0xa4   : > { %v687_v58 = vrot.slane %v682_v56, %v686_v55  ;;  %v691_v59 = vrot.slane %v682_v56, %v690_v57  ;;  %v768_v63 = vld [vmem:[%s640_s0] sm:$0xff]  ;;  %v987_v34 = vld [vmem:[#allocation9 + $0x58] sm:$0xff]  ;;  %v988_v36 = vld [vmem:[#allocation9 + $0x60] sm:$0xff]  ;;  %s2360_s0 = sld [smem:[#allocation24_spill]] }
  0xa5   : > { %1521 = vmatpush1.bf16.msra.mxu0 %v1520_v26  ;;  %v851_v2 = vld [vmem:[%s2157_s8] sm:$0xff]  ;;  %v1545_v26 = vpack.c.bf16 %v981_v25, %v980_v24  ;;  %v989_v37 = vld [vmem:[#allocation9 + $0x68] sm:$0xff]  ;;  %v1070_v42 = vld [vmem:[#allocation10] sm:$0xff]  ;;  %s2361_s8 = sld [smem:[#allocation25_spill]] }
  0xa6   : > { %1523 = vmatprep.subr.bf16.mxu0 %v1522_v27  ;;  %928 = vperm.xlu0 %1671, %v850_v52   ;;  %v1377_v11 = vld [vmem:[%s2314_s7] ss:$0 sm:$0xff]  ;;  %v991_v40 = vld [vmem:[#allocation9 + $0x78] sm:$0xff]  ;;  %v1071_v43 = vld [vmem:[#allocation10 + $0x8] sm:$0xff] }
  0xa7   : > { %v978_v21 = vld [vmem:[#allocation9 + $0x10] sm:$0xff]  ;;  %v1073_v46 = vld [vmem:[#allocation10 + $0x18] sm:$0xff]  ;;  %v1075_v50 = vld [vmem:[#allocation10 + $0x28] sm:$0xff] }
  0xa8   : > { %v1542_v23 = vpack.c.bf16 %v979_v22, %v978_v21  ;;  %v982_v27 = vld [vmem:[#allocation9 + $0x30] sm:$0xff]  ;;  %v1077_v53 = vld [vmem:[#allocation10 + $0x38] sm:$0xff]  ;;  %v1078_v55 = vld [vmem:[#allocation10 + $0x40] sm:$0xff] }
  0xa9   : > { %1525 = vmatpush1.bf16.msra.mxu0 %v1524_v32  ;;  %v1548_v29 = vpack.c.bf16 %v983_v28, %v982_v27  ;;  %v1551_v32 = vpack.c.bf16 %v985_v31, %v984_v30  ;;  %v1076_v52 = vld [vmem:[#allocation10 + $0x30] sm:$0xff]  ;;  %v1079_v56 = vld [vmem:[#allocation10 + $0x48] sm:$0xff] }
  0xaa   : > { %1527 = vmatprep.subr.bf16.mxu0 %v1526_v33  ;;  %v986_v33 = vld [vmem:[#allocation9 + $0x50] sm:$0xff]  ;;  %v1572_v54 = vpack.c.bf16 %v1077_v53, %v1076_v52  ;;  %v1575_v57 = vpack.c.bf16 %v1079_v56, %v1078_v55 }
  0xab   : > { %v1554_v35 = vpack.c.bf16 %v987_v34, %v986_v33 }
  0xad   : > { %1529 = vmatpush1.bf16.msra.mxu0 %v1528_v38  ;;  %v990_v38 = vld [vmem:[#allocation9 + $0x70] sm:$0xff] }
  0xae   : > { %1531 = vmatprep.subr.bf16.mxu0 %v1530_v39  ;;  %v1557_v39 = vpack.c.bf16 %v989_v37, %v988_v36  ;;  %v1560_v41 = vpack.c.bf16 %v991_v40, %v990_v38 }
  0xb1   : > { %1533 = vmatpush1.bf16.msra.mxu0 %v1532_v44  ;;  %v1072_v44 = vld [vmem:[#allocation10 + $0x10] sm:$0xff] }
  0xb2   : > { %1535 = vmatprep.subr.bf16.mxu0 %v1534_v45  ;;  %v1563_v45 = vpack.c.bf16 %v1071_v43, %v1070_v42  ;;  %v1566_v47 = vpack.c.bf16 %v1073_v46, %v1072_v44 }
  0xb5   : > { %1537 = vmatpush1.bf16.msra.mxu0 %v1536_v48  ;;  %v1074_v48 = vld [vmem:[#allocation10 + $0x20] sm:$0xff] }
  0xb6   : > { %1562 = vmatprep.subr.bf16.mxu0 %v1877_v16  ;;  %v1569_v51 = vpack.c.bf16 %v1075_v50, %v1074_v48 }
  0xb8   : > { %759 = vmatmul.mubr.f32.vlgmr.msra.gmra.mrb[0].mxu0 %v2181_v49 }
  0xb9   : > { %1503 = vmatprep.mubr.msk.f32.mxu0 %vm1875_vm0, %v1874_v0  ;;  %1564 = vmatpush3.bf16.msra.mxu0 %v1563_v45 }
  0xba   : > { %1565 = vmatprep.subr.bf16.mxu0 %v1877_v16 }
  0xbd   : > { %1567 = vmatpush3.bf16.msra.mxu0 %v1566_v47 }
  0xbe   : > { %1568 = vmatprep.subr.bf16.mxu0 %v1877_v16 }
  0xc1   : > { %1570 = vmatpush3.bf16.msra.mxu0 %v1569_v51 }
  0xc2   : > { %1571 = vmatprep.subr.bf16.mxu0 %v1877_v16 }
  0xc5   : > { %1573 = vmatpush3.bf16.msra.mxu0 %v1572_v54 }
  0xc6   : > { %1574 = vmatprep.subr.bf16.mxu0 %v1877_v16 }
  0xc9   : > { %1576 = vmatpush3.bf16.msra.mxu0 %v1575_v57 }
  0xca   : > { %1577 = vmatprep.subr.bf16.mxu0 %v1877_v16 }
 0x121   : > { %v847_v3 = vpop.permute.xlu0 %846 }
 0x125   : > { %v929_v6 = vpop.permute.xlu0 %928 }
 0x18b   : > { %v760_v60 = vpop.f32.mrb[0].mxu0 }
 0x18c   : > { %v761_v61 = vadd.f32 %v760_v60, %v687_v58  ;;  %v762_v62 = vpop.f32.mrb[1].mxu0  ;;  %v1080_v58 = vld [vmem:[#allocation10 + $0x50] sm:$0xff] }
 0x18d   : > { %v763_v1 = vadd.f32 %v762_v62, %v691_v59  ;;  %v1081_v59 = vld [vmem:[#allocation10 + $0x58] sm:$0xff]  ;;  %v1083_v62 = vld [vmem:[#allocation10 + $0x68] sm:$0xff] }
 0x18e   : > { %1427 = vmatpush3.msra.mxu1 %v761_v61  ;;  %v1578_v60 = vpack.c.bf16 %v1081_v59, %v1080_v58  ;;  %v1082_v61 = vld [vmem:[#allocation10 + $0x60] sm:$0xff] }
 0x18f   : > { %1429 = vmatmul.mubr.msk.f32.vlgmr.msra.gmra.mrb[0].mxu1 %vm770_vm1, %v768_v63  ;;  %1431 = vmatprep.subr.mxu1 %v1874_v0  ;;  %v1581_v63 = vpack.c.bf16 %v1083_v62, %v1082_v61 }
 0x190   : > { %1432 = vmatpush3.msra.mxu1 %v763_v1  ;;  %1433 = vmatprep.mubr.msk.f32.mxu1 %vm1875_vm0, %v1874_v0 }
 0x191   : > { %1538 = vmatprep.subr.bf16.mxu1 %v1877_v16  ;;  %1579 = vmatpush3.bf16.msra.mxu0 %v1578_v60 }
 0x192   : > { %1580 = vmatprep.subr.bf16.mxu0 %v1877_v16 }
 0x193   : > { %1434 = vmatmul.mubr.msk.f32.vlgmr.msra.gmra.mrb[2].mxu1 %vm770_vm1, %v851_v2 }
 0x194   : > { %1468 = vmatprep.mubr.msk.f32.mxu1 %vm1875_vm0, %v1874_v0  ;;  %v1539_v0 = vpack.c.bf16 %v977_v15, %v976_v14 }
 0x195   : > { %1582 = vmatpush3.bf16.msra.mxu0 %v1581_v63 }
 0x196   : > { %1540 = vmatpush3.bf16.msra.mxu1 %v1539_v0  ;;  %1583 = vmatprep.subr.bf16.mxu0 %v1877_v16  ;;  %v1085_v0 = vld [vmem:[#allocation10 + $0x78] sm:$0xff] }
 0x197   : > { %1541 = vmatprep.subr.bf16.mxu1 %v1877_v16 }
 0x19a   : > { %1543 = vmatpush3.bf16.msra.mxu1 %v1542_v23  ;;  %v1381_v23 = vld [vmem:[%s2360_s0] ss:$0 sm:$0xff]  ;;  %s1197_s0 = scalar_lea.sflag [#allocation6], %s2151_s13 }
 0x19b   : > { %1544 = vmatprep.subr.bf16.mxu1 %v1877_v16 }
 0x19e   : > { %1546 = vmatpush3.bf16.msra.mxu1 %v1545_v26 }
 0x19f   : > { %1547 = vmatprep.subr.bf16.mxu1 %v1877_v16 }
 0x1a2   : > { %1549 = vmatpush3.bf16.msra.mxu1 %v1548_v29 }
 0x1a3   : > { %1550 = vmatprep.subr.bf16.mxu1 %v1877_v16 }
 0x1a6   : > { %1552 = vmatpush3.bf16.msra.mxu1 %v1551_v32 }
 0x1a7   : > { %1553 = vmatprep.subr.bf16.mxu1 %v1877_v16 }
 0x1aa   : > { %1555 = vmatpush3.bf16.msra.mxu1 %v1554_v35 }
 0x1ab   : > { %1556 = vmatprep.subr.bf16.mxu1 %v1877_v16 }
 0x1ae   : > { %1558 = vmatpush3.bf16.msra.mxu1 %v1557_v39  ;;  %v1382_v39 = vld [vmem:[%s2361_s8] ss:$0 sm:$0xff] }
 0x1af   : > { %1559 = vmatprep.subr.bf16.mxu1 %v1877_v16  ;;  %v1084_v16 = vld [vmem:[#allocation10 + $0x70] sm:$0xff] }
 0x1b2   : > { %1561 = vmatpush3.bf16.msra.mxu1 %v1560_v41  ;;  %v1383_v41 = vld [vmem:[%s2362_s20] ss:$0 sm:$0xff] }
 0x262   : > { %v840_v4 = vpop.f32.mrb[0].mxu1 }
 0x263   : > { %v1430_v5 = vpop.f32.mrb[1].mxu1  ;;  %v849_v8 = vmul.f32 %v847_v3, %v840_v4 }
 0x266   : > { %v922_v7 = vpop.f32.mrb[2].mxu1 }
 0x267   : > { %v931_v9 = vmul.f32 %v929_v6, %v922_v7  ;;  %v1435_v10 = vpop.f32.mrb[3].mxu1 }
 0x269   : > { %v932_v12 = vadd.f32 %v931_v9, %v849_v8  ;;  %v1378_v9 = vld [vmem:[%s2357_s30] ss:$0 sm:$0xff] }
 0x26b   : > { %v942_v13 = vadd.f32 %v1377_v11, %v932_v12  ;;  %v1379_v11 = vld [vmem:[%s2358_s21] ss:$0 sm:$0xff]  ;;  %s632_s21 = scalar_lea.vmem [#allocation12], %s1366_s14  ;;  %s1794_s14 = sshll.u32 %s1878_s25, 4  ;;  %s1795_s14 = int_to_ptr.vmem [resolvable:$false] %s1794_s14 }
 0x26c   : > { %s1210_s9 = sshll.u32 %s632_s21, 4  ;;  %s1796_s19 = scalar_lea.vmem %s1795_s14, 256  ;;  %s2265_s9 = int_to_ptr.vmem [resolvable:$true] %s1210_s9 }
 0x26d   : > { %945 = vadd.xlane.f32.xlu1 %v942_v13  ;;  %s1790_s29 = scalar_lea.vmem %s2265_s9, 128  ;;  %p1797_p2 = scmp.lt.s32.totalorder %s2265_s9, %s1795_s14 }
 0x26e   : > { %p1791_p3 = scmp.ne.s32.totalorder %s2265_s9, %s1790_s29  ;;  %p1798_p1 = scmp.lt.s32.totalorder %s1796_s19, %s1790_s29 }
 0x270   : > { %p1792_p7 = pnand %p1791_p3, %p2106_p5  ;;  %p1799_p4 = por %p1798_p1, %p1797_p2 }
 0x272   : > { %p1793_p12 = pneg %p1792_p7 }
 0x274   : > { %p1800_p0 = pnand %p1799_p4, %p1793_p12 }
 0x2fa   : > { %v946_v17 = vpop.xlane.xlu1 %945 }
 0x2fb   : > { %v2215_v18 = vmul.f32 0.03125, %v946_v17  ;;  %v1584_v17 = vpack.c.bf16 %v1085_v0, %v1084_v16 }
 0x2fd   : > { %v2218_v19 = vsub.f32 %v942_v13, %v2215_v18  ;;  %v952_v1 = vmul.f32 %v2215_v18, %v2215_v18  ;;  %1585 = vmatpush3.bf16.msra.mxu0 %v1584_v17  ;;  %v1380_v18 = vld [vmem:[%s2359_s27] ss:$0 sm:$0xff] }
 0x2ff   : > { %v949_v20 = vmul.f32 %v2218_v19, %v2218_v19  ;;  %v953_v2 = vmul.f32 96.0, %v952_v1 }
 0x301   : > { %950 = vadd.xlane.f32.xlu1 %v949_v20 }
 0x38e   : > { %v951_v3 = vpop.xlane.xlu1 %950 }
 0x38f   : > { %v954_v4 = vsub.f32 %v951_v3, %v953_v2 }
 0x391   : > { %v955_v5 = vmul.f32 0.03125, %v954_v4 }
 0x393   : > { %v956_v6 = vmax.f32 %v955_v5, 0.0 }
 0x395   : > { %v957_v7 = vadd.f32 1e-05, %v956_v6 }
 0x397   : > { %1672 = vrsqrt.f32 %v957_v7 }
 0x3a1   : > { %v1673_v8 = vpop.eup %1672 }
 0x3a2   : > { %v959_v10 = vmul.f32 %v1673_v8, %v2218_v19 }
 0x3a4   : > { %v966_v12 = vmul.f32 %v1378_v9, %v959_v10 }
 0x3a6   : > { %v973_v13 = vadd.f32 %v1379_v11, %v966_v12 }
 0x3a8   : > { %v974_v14 = vmax.f32 %v973_v13, 0.0 }
 0x3aa   : > { %v975_v15 = vadd.f32 %v974_v14, %v2181_v49 }
 0x3ac   : > { %1469 = vmatmul.mubr.f32.vlgmr.msra.gmra.mrb[4].mxu1 %v975_v15 }
 0x47f   : > { %v1065_v20 = vpop.f32.mrb[4].mxu1 }
 0x480   : > { %v1066_v19 = vadd.f32 %v1380_v18, %v1065_v20  ;;  %v1470_v21 = vpop.f32.mrb[5].mxu1 }
 0x482   : > { %v1069_v22 = vmax.f32 %v1066_v19, 0.0 }
 0x484   : > { %1504 = vmatmul.mubr.f32.vlgmr.msra.gmra.mrb[2].mxu0 %v1069_v22 }
 0x557   : > { %v1159_v24 = vpop.f32.mrb[2].mxu0 }
 0x558   : > { %v1160_v49 = vadd.f32 %v1381_v23, %v1159_v24  ;;  %v1505_v25 = vpop.f32.mrb[3].mxu0 }
 0x55a   : > { %v1163_v26 = vadd.f32 %v1160_v49, %v975_v15 }
 0x55c   : > { %1166 = vadd.xlane.f32.xlu0 %v1163_v26 }
 0x5e9   : > { %v1167_v27 = vpop.xlane.xlu0 %1166 }
 0x5ea   : > { %v1168_v28 = vmul.f32 0.03125, %v1167_v27 }
 0x5ec   : > { %v1169_v29 = vsub.f32 %v1163_v26, %v1168_v28  ;;  %v1173_v31 = vmul.f32 %v1168_v28, %v1168_v28 }
 0x5ee   : > { %v1170_v30 = vmul.f32 %v1169_v29, %v1169_v29  ;;  %v1174_v32 = vmul.f32 96.0, %v1173_v31 }
 0x5f0   : > { %1171 = vadd.xlane.f32.xlu1 %v1170_v30 }
 0x67d   : > { %v1172_v33 = vpop.xlane.xlu1 %1171 }
 0x67e   : > { %v1175_v34 = vsub.f32 %v1172_v33, %v1174_v32 }
 0x680   : > { %v1176_v35 = vmul.f32 0.03125, %v1175_v34 }
 0x682   : > { %v1177_v36 = vmax.f32 %v1176_v35, 0.0 }
 0x684   : > { %v1178_v37 = vadd.f32 1e-05, %v1177_v36 }
 0x686   : > { %1674 = vrsqrt.f32 %v1178_v37 }
 0x690   : > { %v1675_v38 = vpop.eup %1674 }
 0x691   : > { %v1180_v40 = vmul.f32 %v1675_v38, %v1169_v29 }
 0x693   : > { %v1187_v42 = vmul.f32 %v1382_v39, %v1180_v40 }
 0x695   : > { %v1194_v43 = vadd.f32 %v1383_v41, %v1187_v42 }
 0x697   : > { %1195 = vst [vmem:[%s632_s21] sm:$0xff] %v1194_v43 }
 0x698   : > { %1803 = shalt.err (!%p1800_p0)
}
 0x699   : > { %s1804_s13 = scalar_lea.hbm %s2263_s15, 128  ;;  %s1808_s30 = scalar_lea.hbm %s2363_s11, 256 }
 0x69a   : > { %p1805_p9 = scmp.ne.s32.totalorder %s2263_s15, %s1804_s13  ;;  %p1809_p13 = scmp.lt.u32.totalorder %s2263_s15, %s2363_s11 }
 0x69b   : > { %p1810_p6 = scmp.lt.u32.totalorder %s1808_s30, %s1804_s13  ;;  %p1812_p3 = scmp.lt.u32.totalorder %s1804_s13, %s2263_s15 }
 0x69c   : > { %p1806_p11 = pnand %p1805_p9, %p2106_p5 }
 0x69d   : > { %p1811_p10 = por %p1810_p6, %p1809_p13 }
 0x69e   : > { %p1807_p8 = pneg %p1806_p11 }
 0x69f   : > { %p1813_p7 = por %p1812_p3, %p1811_p10 }
 0x6a1   : > { %p1814_p12 = pnand %p1813_p7, %p1807_p8 }
 0x6a3   : > { %1817 = shalt.err (!%p1814_p12)
}
 0x6a4   : > { %1600 = dma.vmem_to_hbm [thread:$0]  (%p2106_p5), %s2265_s9, 128, %s2263_s15, %s1197_s0  }
 0x6a5 PF: > { %s2364_s21 = sld [smem:[#allocation17_spill]]  ;;  %s2365_s5 = sld [smem:[#allocation18_spill]] }
 0x6a6   : > { %p2367_p1 = scmp.ge.s32.totalorder %s1864_s24, 2 }
 0x6ab   : > { %s1222_s27 = sand.u32 1, %s2364_s21   ;;  %p2366_p2 = scmp.ne.s32.totalorder %s2365_s5, 0 }
 0x6ac   : > { %s1223_s29 = scalar_lea.sflag [#allocation6], %s1222_s27 }
 0x6ad   : > { %p1617_p4 = pnand %p2367_p1, %p2366_p2 }
 0x6af   : > { %1847 = dma.done.wait (!%p1617_p4), %s1223_s29, 128  }
 0x6b0   : > { %1849 = vsyncadd (!%p1617_p4), %s1223_s29, 4294967168  ;;  %p31_p0 = scmp.ge.s32.totalorder %s2074_s28, 4   ;;  %s2368_s21 = smov %s1856_s22 }
 0x6b1   : > { %s2369_s22 = smov %s1860_s23  ;;  %s2370_s23 = smov %s2102_s16 }
 0x6b2   : > { %s2371_s24 = smov %s2074_s28  ;;  %33 = sbr.rel (!%p31_p0) target bundleno = 17 (0x11), region = 153 }
 0x6b9   :  { %1228 = vsyncpa [#allocation5], 1 }
 0x6ba   :  { %1230 = vsyncpa [#allocation5 + $0x1], 1 }
 0x6bb   :  { %1231 = vsyncpa [#allocation8], 1 }
 0x6bc   :  { %1232 = vsyncpa [#allocation11], 1 }
 0x6bd   :  { %1233 = vsyncpa [#allocation6], 1 }
 0x6be   :  { %1235 = vsyncpa [#allocation6 + $0x1], 1 }

// kernel: tpu_custom_call.1
= control target key start
LH: loop header
LB: loop body
LE: loop exit
PB: predicated region body
PF: predicated region fallthrough
CT: control target
= control target key end

     0   :  { %s2307_s0 = inlined_call_operand.vmem [shape: f32[2,8,128], index: 0, kind: input, shape index: {}]   ;;  %s2308_s1 = inlined_call_operand.vmem [shape: f32[2,8,8], index: 1, kind: input, shape index: {}]   ;;  %s2309_s2 = inlined_call_operand.hbm [shape: f32[2,8,8], index: 2, kind: input, shape index: {}]   ;;  %s2310_s3 = inlined_call_operand.vmem [shape: f32[2,8,1], index: 3, kind: input, shape index: {}]   ;;  %s2311_s4 = inlined_call_operand.vmem [shape: f32[2,8,1], index: 4, kind: input, shape index: {}]   ;;  %s2312_s5 = inlined_call_operand.hbm [shape: f32[128,256], index: 5, kind: input, shape index: {}]   ;;  %s2313_s6 = inlined_call_operand.vmem [shape: f32[1,256], index: 6, kind: input, shape index: {}]   ;;  %s2314_s7 = inlined_call_operand.vmem [shape: f32[1,128], index: 7, kind: input, shape index: {}]   ;;  %s2315_s8 = inlined_call_operand.vmem [shape: f32[1,128], index: 8, kind: input, shape index: {}]   ;;  %s2316_s9 = inlined_call_operand.vmem [shape: f32[1,128], index: 9, kind: input, shape index: {}]   ;;  %s2317_s10 = inlined_call_operand.hbm [shape: f32[1,128,128], index: 10, kind: input, shape index: {}]   ;;  %s2318_s11 = inlined_call_operand.vmem [shape: f32[1,1,128], index: 11, kind: input, shape index: {}]   ;;  %s2319_s12 = inlined_call_operand.hbm [shape: f32[1,128,128], index: 12, kind: input, shape index: {}]   ;;  %s2320_s13 = inlined_call_operand.vmem [shape: f32[1,128], index: 13, kind: input, shape index: {}]   ;;  %s2321_s14 = inlined_call_operand.vmem [shape: f32[1,128], index: 14, kind: input, shape index: {}]   ;;  %s2322_s15 = inlined_call_operand.vmem [shape: f32[1,128], index: 15, kind: input, shape index: {}]   ;;  %s2323_s16 = inlined_call_operand.hbm [shape: f32[2,8,128], index: 16, kind: output, shape index: {}]  }
   0x1   :  { %2330 = sst [smem:[#allocation19_spill]] %s2307_s0 }
   0x2   :  { %2331 = sst [smem:[#allocation20_spill]] %s2312_s5 }
   0x3   :  { %2332 = sst [smem:[#allocation21_spill]] %s2315_s8 }
   0x4   :  { %2333 = sst [smem:[#allocation22_spill]] %s2316_s9 }
   0x5   :  { %2334 = sst [smem:[#allocation23_spill]] %s2318_s11 }
   0x6   :  { %2335 = sst [smem:[#allocation24_spill]] %s2320_s13 }
   0x7   :  { %2336 = sst [smem:[#allocation25_spill]] %s2321_s14 }
   0x8   :  { %2337 = sst [smem:[#allocation26_spill]] %s2322_s15 }
   0x9   :  { %2338 = sst [smem:[#allocation27_spill]] %s2323_s16 }
   0xa   :  { %21 = vsyncpa [#allocation5], 0 }
   0xb   :  { %23 = vsyncpa [#allocation5 + $0x1], 0 }
   0xc   :  { %24 = vsyncpa [#allocation8], 0 }
   0xd   :  { %25 = vsyncpa [#allocation11], 0 }
   0xe   :  { %26 = vsyncpa [#allocation6], 0 }
   0xf   :  { %28 = vsyncpa [#allocation6 + $0x1], 0  ;;  %s1964_s21 = smov 0   ;;  %s1966_s22 = smov 0  }
  0x10   :  { %s1968_s23 = smov 0   ;;  %s1970_s24 = smov 0  }
  0x11 LB: > { %2339 = sst [smem:[#allocation17_spill]] %s1852_s21  ;;  %s1985_s25 = sadd.s32 4294967295, %s1864_s24   ;;  %s1864_s24 = sphi %s1970_s24, %s2371_s24   ;;  %s1860_s23 = sphi %s1968_s23, %s2370_s23   ;;  %s1856_s22 = sphi %s1966_s22, %s2369_s22   ;;  %s1852_s21 = sphi %s1964_s21, %s2368_s21  }
  0x12   : > { %s1357_s26 = sadd.s32 4294967294, %s1864_s24   ;;  %p106_p0 = scmp.ne.s32.totalorder %s1856_s22, %s1852_s21 }
  0x13   : > { %p2327_p1 = scmp.eq.s32.totalorder %s1985_s25, 0  ;;  %p419_p3 = scmp.eq.s32.totalorder %s1357_s26, 1 }
  0x14   : > { %p1358_p5 = scmp.ge.s32.totalorder %s1864_s24, 1  ;;  %p426_p7 = scmp.lt.s32.totalorder %s1864_s24, 3 }
  0x15   : > { %p1994_p4 = por %p2327_p1, %p106_p0  ;;  %p1999_p6 = por %p419_p3, %p106_p0 }
  0x16   : > { %p2004_p8 = pnand %p1358_p5, %p426_p7  ;;  %s1866_s30 = smov [#allocation7]  }
  0x17   : > { %s2340_s27 = scalar_select %p1994_p4, 1, 0 }
  0x18   : > { %s2341_s28 = scalar_select %p1999_p6, 1, 0 }
  0x19   : > { %s2343_s29 = scalar_select %p2004_p8, 1, 0 }
  0x1a   : > { %2342 = sst [smem:[#allocation18_spill]] %s2341_s28  ;;  %s438_s0 = sshll.u32 %s1866_s30, 4  ;;  %s2008_s0 = int_to_ptr.vmem [resolvable:$true] %s438_s0 }
  0x1b   : > { %p1602_p9 = pneg %p2004_p8  ;;  %s1867_s18 = smov [#allocation9]  }
  0x1c   : > { %s463_s19 = sshll.u32 %s1867_s18, 4  ;;  %s2345_s5 = sld [smem:[#allocation20_spill]]  ;;  %s2019_s19 = int_to_ptr.vmem [resolvable:$true] %s463_s19 }
  0x1d   : > { %p2015_p11 = pnand %p1602_p9, %p2327_p1 }
  0x1f   : > { %p2029_p13 = pneg %p2015_p11 }
  0x22   : > { %s1676_s28 = scalar_lea.hbm %s2345_s5, 4096 }
  0x23   : > { %p1677_p12 = scmp.ne.s32.totalorder %s2345_s5, %s1676_s28  ;;  %p1683_p5 = scmp.lt.u32.totalorder %s1676_s28, %s2345_s5 }
  0x25   : > { %p1679_p0 = pnand %p2029_p13, %p1677_p12 }
  0x27   : > { %p1680_p3 = pneg %p1679_p0 }
  0x29   : > { %p1685_p7 = pnand %p1683_p5, %p1680_p3 }
  0x2b   : > { %1688 = shalt.err (!%p1685_p7)
}
  0x2c   : > { %s1689_s21 = scalar_lea.vmem %s2008_s0, 4096  ;;  %p1697_p2 = scmp.lt.s32.totalorder %s2008_s0, %s2008_s0 }
  0x2d   : > { %p1690_p9 = scmp.ne.s32.totalorder %s2008_s0, %s1689_s21  ;;  %p1698_p6 = scmp.lt.s32.totalorder %s1689_s21, %s1689_s21 }
  0x2f   : > { %p1692_p10 = pnand %p1690_p9, %p2029_p13  ;;  %p1699_p12 = por %p1698_p6, %p1697_p2 }
  0x31   : > { %p1693_p1 = pneg %p1692_p10 }
  0x33   : > { %p1700_p0 = pnand %p1699_p12, %p1693_p1 }
  0x35   : > { %1703 = shalt.err (!%p1700_p0)
}
  0x36   : > { %s1868_s20 = smov 256   ;;  %s1869_s15 = smov 16  }
  0x37   : > { %1605 = dma.hbm_to_vmem [thread:$0]  (!%p2015_p11), %s2345_s5, 4096, %s2008_s0, [#allocation8], %s1868_s20, %s1868_s20, %s1869_s15  }
  0x38   : > { %s1704_s14 = scalar_lea.hbm %s2317_s10, 2048 }
  0x39   : > { %p1705_p2 = scmp.ne.s32.totalorder %s2317_s10, %s1704_s14  ;;  %p1711_p10 = scmp.lt.u32.totalorder %s1704_s14, %s2317_s10 }
  0x3b   : > { %p1707_p1 = pnand %p1705_p2, %p2029_p13 }
  0x3d   : > { %p1708_p6 = pneg %p1707_p1 }
  0x3f   : > { %p1713_p3 = pnand %p1711_p10, %p1708_p6 }
  0x41   : > { %1716 = shalt.err (!%p1713_p3)
}
  0x42   : > { %s1717_s0 = scalar_lea.vmem %s2019_s19, 2048  ;;  %p1725_p12 = scmp.lt.s32.totalorder %s2019_s19, %s2019_s19 }
  0x43   : > { %p1718_p5 = scmp.ne.s32.totalorder %s2019_s19, %s1717_s0  ;;  %p1726_p0 = scmp.lt.s32.totalorder %s1717_s0, %s1717_s0 }
  0x45   : > { %p1720_p7 = pnand %p1718_p5, %p2029_p13  ;;  %p1727_p2 = por %p1726_p0, %p1725_p12 }
  0x47   : > { %p1721_p9 = pneg %p1720_p7 }
  0x49   : > { %p1728_p1 = pnand %p1727_p2, %p1721_p9 }
  0x4b   : > { %1731 = shalt.err (!%p1728_p1)
}
  0x4c   : > { %s1870_s11 = smov 128   ;;  %s1871_s9 = smov 8  }
  0x4d   : > { %1608 = dma.hbm_to_vmem [thread:$0]  (!%p2015_p11), %s2317_s10, 2048, %s2019_s19, [#allocation8], %s1870_s11, %s1870_s11, %s1871_s9  }
  0x4e   : > { %s1872_s20 = smov [#allocation10]   ;;  %s2074_s28 = sadd.s32 1, %s1864_s24  }
  0x4f   : > { %s479_s15 = sshll.u32 %s1872_s20, 4  ;;  %s1732_s18 = scalar_lea.hbm %s2319_s12, 2048  ;;  %s480_s15 = int_to_ptr.vmem [resolvable:$true] %s479_s15 }
  0x50   : > { %p1733_p6 = scmp.ne.s32.totalorder %s2319_s12, %s1732_s18  ;;  %p1739_p5 = scmp.lt.u32.totalorder %s1732_s18, %s2319_s12 }
  0x52   : > { %p1735_p10 = pnand %p1733_p6, %p2029_p13 }
  0x54   : > { %p1736_p3 = pneg %p1735_p10 }
  0x56   : > { %p1741_p7 = pnand %p1739_p5, %p1736_p3 }
  0x58   : > { %1744 = shalt.err (!%p1741_p7)
}
  0x59   : > { %s1745_s19 = scalar_lea.vmem %s480_s15, 2048  ;;  %p1753_p2 = scmp.lt.s32.totalorder %s480_s15, %s480_s15 }
  0x5a   : > { %p1746_p9 = scmp.ne.s32.totalorder %s480_s15, %s1745_s19  ;;  %p1754_p1 = scmp.lt.s32.totalorder %s1745_s19, %s1745_s19 }
  0x5c   : > { %p1748_p12 = pnand %p1746_p9, %p2029_p13  ;;  %p1755_p4 = por %p1754_p1, %p1753_p2 }
  0x5e   : > { %p1749_p0 = pneg %p1748_p12 }
  0x60   : > { %p1756_p8 = pnand %p1755_p4, %p1749_p0 }
  0x62   : > { %1759 = shalt.err (!%p1756_p8)
}
  0x63   : > { %1611 = dma.hbm_to_vmem [thread:$0]  (!%p2015_p11), %s2319_s12, 2048, %s480_s15, [#allocation11], %s1870_s11, %s1870_s11, %s1871_s9  }
  0x64   : > { %s90_s5 = ssub.s32 %s1864_s24, %s2074_s28  ;;  %s93_s8 = sadd.s32 1, %s1860_s23 }
  0x65   : > { %p91_p4 = scmp.eq.s32.totalorder %s90_s5, 0  ;;  %p100_p8 = scmp.ne.s32.totalorder %s1860_s23, %s1856_s22 }
  0x66   : > { %p101_p13 = scmp.eq.s32.totalorder %s1864_s24, 0  ;;  %p1623_p6 = scmp.lt.s32.totalorder %s1864_s24, 2 }
  0x67   : > { %s2102_s16 = scalar_select %p91_p4, %s1860_s23, %s93_s8  }
  0x68   : > { %p102_p10 = por %p101_p13, %p100_p8  ;;  %p2347_p3 = scmp.eq.s32.totalorder %s1985_s25, 1 }
  0x69   : > { %s516_s20 = sand.u32 1, %s1860_s23   ;;  %s1364_s26 = sshll.u32 %s1864_s24, 7 }
  0x6a   : > { %p2106_p5 = por %p2347_p3, %p100_p8  ;;  %s1363_s30 = sshll.u32 %s516_s20, 3 }
  0x6b   : > { %s2115_s11 = scalar_lea.hbm %s2309_s2, %s1364_s26  ;;  %s520_s9 = scalar_lea.vmem [#allocation4], %s1363_s30 }
  0x6c   : > { %s527_s15 = sshll.u32 %s520_s9, 4  ;;  %p2117_p11 = pnand %p1623_p6, %p102_p10  ;;  %s2121_s15 = int_to_ptr.vmem [resolvable:$true] %s527_s15 }
  0x6d   : > { %s517_s19 = scalar_lea.sflag [#allocation5], %s516_s20  ;;  %s1760_s13 = scalar_lea.hbm %s2115_s11, 128 }
  0x6e   : > { %p1761_p7 = scmp.ne.s32.totalorder %s2115_s11, %s1760_s13  ;;  %p1762_p9 = pneg %p2117_p11 }
  0x6f   : > { %s1765_s8 = scalar_lea.hbm %s2309_s2, 256  ;;  %p1766_p2 = scmp.lt.u32.totalorder %s2115_s11, %s2309_s2 }
  0x70   : > { %p1763_p12 = pnand %p1762_p9, %p1761_p7  ;;  %p1767_p1 = scmp.lt.u32.totalorder %s1765_s8, %s1760_s13 }
  0x71   : > { %p1769_p8 = scmp.lt.u32.totalorder %s1760_s13, %s2115_s11 }
  0x72   : > { %p1764_p0 = pneg %p1763_p12  ;;  %p1768_p4 = por %p1767_p1, %p1766_p2 }
  0x74   : > { %p1770_p13 = por %p1769_p8, %p1768_p4 }
  0x76   : > { %p1771_p6 = pnand %p1770_p13, %p1764_p0 }
  0x78   : > { %1774 = shalt.err (!%p1771_p6)
}
  0x79   : > { %s1775_s20 = scalar_lea.vmem %s2121_s15, 128  ;;  %s1873_s18 = smov [#allocation4]  }
  0x7a   : > { %p1776_p10 = scmp.ne.s32.totalorder %s2121_s15, %s1775_s20  ;;  %s1780_s21 = sshll.u32 %s1873_s18, 4  ;;  %s1781_s21 = int_to_ptr.vmem [resolvable:$false] %s1780_s21 }
  0x7b   : > { %s1782_s9 = scalar_lea.vmem %s1781_s21, 256  ;;  %p1783_p12 = scmp.lt.s32.totalorder %s2121_s15, %s1781_s21 }
  0x7c   : > { %p1778_p3 = pnand %p1776_p10, %p1762_p9  ;;  %p1784_p2 = scmp.lt.s32.totalorder %s1782_s9, %s1775_s20 }
  0x7e   : > { %p1779_p7 = pneg %p1778_p3  ;;  %p1785_p1 = por %p1784_p2, %p1783_p12 }
  0x80   : > { %p1786_p4 = pnand %p1785_p1, %p1779_p7 }
  0x82   : > { %1789 = shalt.err (!%p1786_p4)
}
  0x83   : > { %1615 = dma.hbm_to_vmem [thread:$0]  (!%p2117_p11), %s2115_s11, 128, %s2121_s15, %s517_s19  }
  0x84   : > { %p2350_p0 = scmp.ne.s32.totalorder %s2343_s29, 0 }
  0x85   : > { %s2151_s13 = sand.u32 (!%p2350_p0), 1, %s1856_s22   ;;  %p2351_p9 = scmp.ne.s32.totalorder (!%p2350_p0), %s2340_s27, 0 }
  0x86   : > { %550 = sbr.rel (%p2350_p0) target bundleno = 1701 (0x6a5), region = 84  ;;  %s1366_s14 = sshll.u32 (!%p2350_p0), %s2151_s13, 3 }
  0x87   : > { %s553_s5 = scalar_lea.sflag (!%p2350_p0), [#allocation5], %s2151_s13  ;;  %s2157_s8 = scalar_lea.vmem (!%p2350_p0), [#allocation4], %s1366_s14 }
  0x8d   : > { %1835 = dma.done.wait (%p2351_p9), %s553_s5, 128  }
  0x8e   : > { %1837 = vsyncadd (%p2351_p9), %s553_s5, 4294967168  ;;  %p2352_p11 = scmp.eq.s32.totalorder %s1985_s25, 0 }
  0x90   : > { %1839 = dma.done.wait (%p2352_p11), [#allocation8], 6144   ;;  %p2353_p8 = pmov %p2352_p11 }
  0x92   : > { %1841 = vsyncadd (%p2353_p8), [#allocation8], 4294961152  ;;  %p2354_p13 = pmov %p2353_p8 }
  0x93   : > { %p2355_p6 = pmov %p2353_p8 }
  0x94   : > { %1843 = dma.done.wait (%p2354_p13), [#allocation11], 2048  }
  0x95   : > { %1845 = vsyncadd (%p2355_p6), [#allocation11], 4294965248  ;;  %v1874_v0 = vmov 0.0   ;;  %v651_v1 = vld [vmem:[#allocation7 + $0x8] sm:$0xff]  ;;  %v653_v2 = vld [vmem:[#allocation7 + $0x18] sm:$0xff]  ;;  %p633_p10 = scmp.lt.s32.totalorder %s1985_s25, 1  ;;  %v684_v53 = vlaneseq }
  0x96   : > { %758 = vmatprep.mubr.f32.mxu0 %v1874_v0  ;;  %1426 = vmatprep.subr.mxu1 %v1874_v0  ;;  %v650_v3 = vld [vmem:[#allocation7] sm:$0xff]  ;;  %v1506_v4 = vpack.c.bf16 %v653_v2, %v651_v1  ;;  %v652_v5 = vld [vmem:[#allocation7 + $0x10] sm:$0xff]  ;;  %v655_v6 = vld [vmem:[#allocation7 + $0x28] sm:$0xff]  ;;  %s2356_s0 = sld [smem:[#allocation19_spill]]  ;;  %vm1875_vm0 = vmmov 0   ;;  %v1876_v50 = vmov 0  }
  0x97   : > { %v657_v7 = vld [vmem:[#allocation7 + $0x38] sm:$0xff]  ;;  %v1508_v8 = vpack.c.bf16 %v652_v5, %v650_v3  ;;  %v654_v10 = vld [vmem:[#allocation7 + $0x20] sm:$0xff]  ;;  %v656_v11 = vld [vmem:[#allocation7 + $0x30] sm:$0xff]  ;;  %s634_s27 = scalar_select %p633_p10, %s1985_s25, 1  ;;  %1428 = vmatprep.mubr.msk.f32.mxu1 %vm1875_vm0, %v1874_v0  ;;  %1671 = vset.pattern.permute.xlu0 %v1876_v50  ;;  %v685_v54 = vshrl.u32 %v684_v53, 7  ;;  %vm770_vm1 = vcmask 64512  }
  0x98   : > { %v1510_v9 = vpack.c.bf16 %v657_v7, %v655_v6  ;;  %v659_v12 = vld [vmem:[#allocation7 + $0x48] sm:$0xff]  ;;  %1507 = vmatprep.subr.bf16.mxu0 %v1506_v4  ;;  %v661_v13 = vld [vmem:[#allocation7 + $0x58] sm:$0xff]  ;;  %v1512_v14 = vpack.c.bf16 %v656_v11, %v654_v10  ;;  %v658_v16 = vld [vmem:[#allocation7 + $0x40] sm:$0xff]  ;;  %s2357_s30 = sld [smem:[#allocation21_spill]]  ;;  %s2358_s21 = sld [smem:[#allocation22_spill]] }
  0x99   : > { %1509 = vmatpush1.bf16.msra.mxu0 %v1508_v8  ;;  %v1514_v15 = vpack.c.bf16 %v661_v13, %v659_v12  ;;  %v660_v17 = vld [vmem:[#allocation7 + $0x50] sm:$0xff]  ;;  %v663_v18 = vld [vmem:[#allocation7 + $0x68] sm:$0xff]  ;;  %v665_v19 = vld [vmem:[#allocation7 + $0x78] sm:$0xff]  ;;  %s2175_s29 = sshll.u32 %s634_s27, 3  ;;  %v686_v55 = vsub.s32 0, %v685_v54  ;;  %v690_v57 = vsub.s32 1, %v685_v54 }
  0x9a   : > { %1511 = vmatprep.subr.bf16.mxu0 %v1510_v9  ;;  %v1516_v20 = vpack.c.bf16 %v660_v17, %v658_v16  ;;  %v1518_v21 = vpack.c.bf16 %v665_v19, %v663_v18  ;;  %v662_v22 = vld [vmem:[#allocation7 + $0x60] sm:$0xff]  ;;  %v664_v23 = vld [vmem:[#allocation7 + $0x70] sm:$0xff]  ;;  %v667_v24 = vld [vmem:[#allocation7 + $0x88] sm:$0xff]  ;;  %s644_s20 = scalar_lea.vmem %s2310_s3, %s2175_s29  ;;  %s648_s9 = scalar_lea.vmem %s2311_s4, %s2175_s29  ;;  %v1877_v16 = vmov 0.0|0.0  }
  0x9b   : > { %v669_v25 = vld [vmem:[#allocation7 + $0x98] sm:$0xff]  ;;  %v1520_v26 = vpack.c.bf16 %v664_v23, %v662_v22  ;;  %v666_v28 = vld [vmem:[#allocation7 + $0x80] sm:$0xff]  ;;  %v668_v29 = vld [vmem:[#allocation7 + $0x90] sm:$0xff]  ;;  %s2359_s27 = sld [smem:[#allocation23_spill]]  ;;  %s1385_s18 = sshll.u32 %s1985_s25, 7 }
  0x9c   : > { %v1522_v27 = vpack.c.bf16 %v669_v25, %v667_v24  ;;  %v671_v30 = vld [vmem:[#allocation7 + $0xa8] sm:$0xff]  ;;  %v673_v31 = vld [vmem:[#allocation7 + $0xb8] sm:$0xff]  ;;  %v1524_v32 = vpack.c.bf16 %v668_v29, %v666_v28  ;;  %v670_v34 = vld [vmem:[#allocation7 + $0xa0] sm:$0xff]  ;;  %s636_s19 = scalar_lea.vmem %s2356_s0, %s2175_s29  ;;  %s640_s0 = scalar_lea.vmem %s2308_s1, %s2175_s29 }
  0x9d   : > { %1513 = vmatpush1.bf16.msra.mxu0 %v1512_v14  ;;  %v1526_v33 = vpack.c.bf16 %v673_v31, %v671_v30  ;;  %v672_v35 = vld [vmem:[#allocation7 + $0xb0] sm:$0xff]  ;;  %v675_v36 = vld [vmem:[#allocation7 + $0xc8] sm:$0xff]  ;;  %v677_v37 = vld [vmem:[#allocation7 + $0xd8] sm:$0xff]  ;;  %s2363_s11 = sld [smem:[#allocation27_spill]]  ;;  %s1878_s25 = smov [#allocation12]  }
  0x9e   : > { %1515 = vmatprep.subr.bf16.mxu0 %v1514_v15  ;;  %v1528_v38 = vpack.c.bf16 %v672_v35, %v670_v34  ;;  %v1530_v39 = vpack.c.bf16 %v677_v37, %v675_v36  ;;  %v674_v40 = vld [vmem:[#allocation7 + $0xc0] sm:$0xff]  ;;  %v676_v41 = vld [vmem:[#allocation7 + $0xd0] sm:$0xff]  ;;  %v679_v42 = vld [vmem:[#allocation7 + $0xe8] sm:$0xff] }
  0x9f   : > { %v681_v43 = vld [vmem:[#allocation7 + $0xf8] sm:$0xff]  ;;  %v1532_v44 = vpack.c.bf16 %v676_v41, %v674_v40  ;;  %v678_v46 = vld [vmem:[#allocation7 + $0xe0] sm:$0xff]  ;;  %v680_v47 = vld [vmem:[#allocation7 + $0xf0] sm:$0xff] }
  0xa0   : > { %v1534_v45 = vpack.c.bf16 %v681_v43, %v679_v42  ;;  %v1536_v48 = vpack.c.bf16 %v680_v47, %v678_v46  ;;  %v2181_v49 = vld [vmem:[%s636_s19] sm:$0xff]  ;;  %v976_v14 = vld [vmem:[#allocation9] sm:$0xff]  ;;  %v977_v15 = vld [vmem:[#allocation9 + $0x8] sm:$0xff] }
  0xa1   : > { %1517 = vmatpush1.bf16.msra.mxu0 %v1516_v20  ;;  %v767_v51 = vld [vmem:[%s644_s20] sm:$0xff]  ;;  %v979_v22 = vld [vmem:[#allocation9 + $0x18] sm:$0xff]  ;;  %v980_v24 = vld [vmem:[#allocation9 + $0x20] sm:$0xff]  ;;  %s2362_s20 = sld [smem:[#allocation26_spill]] }
  0xa2   : > { %1519 = vmatprep.subr.bf16.mxu0 %v1518_v21  ;;  %846 = vperm.xlu0 %1671, %v767_v51   ;;  %v850_v52 = vld [vmem:[%s648_s9] sm:$0xff]  ;;  %v981_v25 = vld [vmem:[#allocation9 + $0x28] sm:$0xff]  ;;  %v983_v28 = vld [vmem:[#allocation9 + $0x38] sm:$0xff] }
  0xa3   : > { %v682_v56 = vld [vmem:[%s2313_s6] sm:$0x3]  ;;  %v984_v30 = vld [vmem:[#allocation9 + $0x40] sm:$0xff]  ;;  %v985_v31 = vld [vmem:[#allocation9 + $0x48] sm:$0xff]  ;;  %s2263_s15 = scalar_lea.hbm %s2363_s11, %s1385_s18 }
  0xa4   : > { %v687_v58 = vrot.slane %v682_v56, %v686_v55  ;;  %v691_v59 = vrot.slane %v682_v56, %v690_v57  ;;  %v768_v63 = vld [vmem:[%s640_s0] sm:$0xff]  ;;  %v987_v34 = vld [vmem:[#allocation9 + $0x58] sm:$0xff]  ;;  %v988_v36 = vld [vmem:[#allocation9 + $0x60] sm:$0xff]  ;;  %s2360_s0 = sld [smem:[#allocation24_spill]] }
  0xa5   : > { %1521 = vmatpush1.bf16.msra.mxu0 %v1520_v26  ;;  %v851_v2 = vld [vmem:[%s2157_s8] sm:$0xff]  ;;  %v1545_v26 = vpack.c.bf16 %v981_v25, %v980_v24  ;;  %v989_v37 = vld [vmem:[#allocation9 + $0x68] sm:$0xff]  ;;  %v1070_v42 = vld [vmem:[#allocation10] sm:$0xff]  ;;  %s2361_s8 = sld [smem:[#allocation25_spill]] }
  0xa6   : > { %1523 = vmatprep.subr.bf16.mxu0 %v1522_v27  ;;  %928 = vperm.xlu0 %1671, %v850_v52   ;;  %v1377_v11 = vld [vmem:[%s2314_s7] ss:$0 sm:$0xff]  ;;  %v991_v40 = vld [vmem:[#allocation9 + $0x78] sm:$0xff]  ;;  %v1071_v43 = vld [vmem:[#allocation10 + $0x8] sm:$0xff] }
  0xa7   : > { %v978_v21 = vld [vmem:[#allocation9 + $0x10] sm:$0xff]  ;;  %v1073_v46 = vld [vmem:[#allocation10 + $0x18] sm:$0xff]  ;;  %v1075_v50 = vld [vmem:[#allocation10 + $0x28] sm:$0xff] }
  0xa8   : > { %v1542_v23 = vpack.c.bf16 %v979_v22, %v978_v21  ;;  %v982_v27 = vld [vmem:[#allocation9 + $0x30] sm:$0xff]  ;;  %v1077_v53 = vld [vmem:[#allocation10 + $0x38] sm:$0xff]  ;;  %v1078_v55 = vld [vmem:[#allocation10 + $0x40] sm:$0xff] }
  0xa9   : > { %1525 = vmatpush1.bf16.msra.mxu0 %v1524_v32  ;;  %v1548_v29 = vpack.c.bf16 %v983_v28, %v982_v27  ;;  %v1551_v32 = vpack.c.bf16 %v985_v31, %v984_v30  ;;  %v1076_v52 = vld [vmem:[#allocation10 + $0x30] sm:$0xff]  ;;  %v1079_v56 = vld [vmem:[#allocation10 + $0x48] sm:$0xff] }
  0xaa   : > { %1527 = vmatprep.subr.bf16.mxu0 %v1526_v33  ;;  %v986_v33 = vld [vmem:[#allocation9 + $0x50] sm:$0xff]  ;;  %v1572_v54 = vpack.c.bf16 %v1077_v53, %v1076_v52  ;;  %v1575_v57 = vpack.c.bf16 %v1079_v56, %v1078_v55 }
  0xab   : > { %v1554_v35 = vpack.c.bf16 %v987_v34, %v986_v33 }
  0xad   : > { %1529 = vmatpush1.bf16.msra.mxu0 %v1528_v38  ;;  %v990_v38 = vld [vmem:[#allocation9 + $0x70] sm:$0xff] }
  0xae   : > { %1531 = vmatprep.subr.bf16.mxu0 %v1530_v39  ;;  %v1557_v39 = vpack.c.bf16 %v989_v37, %v988_v36  ;;  %v1560_v41 = vpack.c.bf16 %v991_v40, %v990_v38 }
  0xb1   : > { %1533 = vmatpush1.bf16.msra.mxu0 %v1532_v44  ;;  %v1072_v44 = vld [vmem:[#allocation10 + $0x10] sm:$0xff] }
  0xb2   : > { %1535 = vmatprep.subr.bf16.mxu0 %v1534_v45  ;;  %v1563_v45 = vpack.c.bf16 %v1071_v43, %v1070_v42  ;;  %v1566_v47 = vpack.c.bf16 %v1073_v46, %v1072_v44 }
  0xb5   : > { %1537 = vmatpush1.bf16.msra.mxu0 %v1536_v48  ;;  %v1074_v48 = vld [vmem:[#allocation10 + $0x20] sm:$0xff] }
  0xb6   : > { %1562 = vmatprep.subr.bf16.mxu0 %v1877_v16  ;;  %v1569_v51 = vpack.c.bf16 %v1075_v50, %v1074_v48 }
  0xb8   : > { %759 = vmatmul.mubr.f32.vlgmr.msra.gmra.mrb[0].mxu0 %v2181_v49 }
  0xb9   : > { %1503 = vmatprep.mubr.msk.f32.mxu0 %vm1875_vm0, %v1874_v0  ;;  %1564 = vmatpush3.bf16.msra.mxu0 %v1563_v45 }
  0xba   : > { %1565 = vmatprep.subr.bf16.mxu0 %v1877_v16 }
  0xbd   : > { %1567 = vmatpush3.bf16.msra.mxu0 %v1566_v47 }
  0xbe   : > { %1568 = vmatprep.subr.bf16.mxu0 %v1877_v16 }
  0xc1   : > { %1570 = vmatpush3.bf16.msra.mxu0 %v1569_v51 }
  0xc2   : > { %1571 = vmatprep.subr.bf16.mxu0 %v1877_v16 }
  0xc5   : > { %1573 = vmatpush3.bf16.msra.mxu0 %v1572_v54 }
  0xc6   : > { %1574 = vmatprep.subr.bf16.mxu0 %v1877_v16 }
  0xc9   : > { %1576 = vmatpush3.bf16.msra.mxu0 %v1575_v57 }
  0xca   : > { %1577 = vmatprep.subr.bf16.mxu0 %v1877_v16 }
 0x121   : > { %v847_v3 = vpop.permute.xlu0 %846 }
 0x125   : > { %v929_v6 = vpop.permute.xlu0 %928 }
 0x18b   : > { %v760_v60 = vpop.f32.mrb[0].mxu0 }
 0x18c   : > { %v761_v61 = vadd.f32 %v760_v60, %v687_v58  ;;  %v762_v62 = vpop.f32.mrb[1].mxu0  ;;  %v1080_v58 = vld [vmem:[#allocation10 + $0x50] sm:$0xff] }
 0x18d   : > { %v763_v1 = vadd.f32 %v762_v62, %v691_v59  ;;  %v1081_v59 = vld [vmem:[#allocation10 + $0x58] sm:$0xff]  ;;  %v1083_v62 = vld [vmem:[#allocation10 + $0x68] sm:$0xff] }
 0x18e   : > { %1427 = vmatpush3.msra.mxu1 %v761_v61  ;;  %v1578_v60 = vpack.c.bf16 %v1081_v59, %v1080_v58  ;;  %v1082_v61 = vld [vmem:[#allocation10 + $0x60] sm:$0xff] }
 0x18f   : > { %1429 = vmatmul.mubr.msk.f32.vlgmr.msra.gmra.mrb[0].mxu1 %vm770_vm1, %v768_v63  ;;  %1431 = vmatprep.subr.mxu1 %v1874_v0  ;;  %v1581_v63 = vpack.c.bf16 %v1083_v62, %v1082_v61 }
 0x190   : > { %1432 = vmatpush3.msra.mxu1 %v763_v1  ;;  %1433 = vmatprep.mubr.msk.f32.mxu1 %vm1875_vm0, %v1874_v0 }
 0x191   : > { %1538 = vmatprep.subr.bf16.mxu1 %v1877_v16  ;;  %1579 = vmatpush3.bf16.msra.mxu0 %v1578_v60 }
 0x192   : > { %1580 = vmatprep.subr.bf16.mxu0 %v1877_v16 }
 0x193   : > { %1434 = vmatmul.mubr.msk.f32.vlgmr.msra.gmra.mrb[2].mxu1 %vm770_vm1, %v851_v2 }
 0x194   : > { %1468 = vmatprep.mubr.msk.f32.mxu1 %vm1875_vm0, %v1874_v0  ;;  %v1539_v0 = vpack.c.bf16 %v977_v15, %v976_v14 }
 0x195   : > { %1582 = vmatpush3.bf16.msra.mxu0 %v1581_v63 }
 0x196   : > { %1540 = vmatpush3.bf16.msra.mxu1 %v1539_v0  ;;  %1583 = vmatprep.subr.bf16.mxu0 %v1877_v16  ;;  %v1085_v0 = vld [vmem:[#allocation10 + $0x78] sm:$0xff] }
 0x197   : > { %1541 = vmatprep.subr.bf16.mxu1 %v1877_v16 }
 0x19a   : > { %1543 = vmatpush3.bf16.msra.mxu1 %v1542_v23  ;;  %v1381_v23 = vld [vmem:[%s2360_s0] ss:$0 sm:$0xff]  ;;  %s1197_s0 = scalar_lea.sflag [#allocation6], %s2151_s13 }
 0x19b   : > { %1544 = vmatprep.subr.bf16.mxu1 %v1877_v16 }
 0x19e   : > { %1546 = vmatpush3.bf16.msra.mxu1 %v1545_v26 }
 0x19f   : > { %1547 = vmatprep.subr.bf16.mxu1 %v1877_v16 }
 0x1a2   : > { %1549 = vmatpush3.bf16.msra.mxu1 %v1548_v29 }
 0x1a3   : > { %1550 = vmatprep.subr.bf16.mxu1 %v1877_v16 }
 0x1a6   : > { %1552 = vmatpush3.bf16.msra.mxu1 %v1551_v32 }
 0x1a7   : > { %1553 = vmatprep.subr.bf16.mxu1 %v1877_v16 }
 0x1aa   : > { %1555 = vmatpush3.bf16.msra.mxu1 %v1554_v35 }
 0x1ab   : > { %1556 = vmatprep.subr.bf16.mxu1 %v1877_v16 }
 0x1ae   : > { %1558 = vmatpush3.bf16.msra.mxu1 %v1557_v39  ;;  %v1382_v39 = vld [vmem:[%s2361_s8] ss:$0 sm:$0xff] }
 0x1af   : > { %1559 = vmatprep.subr.bf16.mxu1 %v1877_v16  ;;  %v1084_v16 = vld [vmem:[#allocation10 + $0x70] sm:$0xff] }
 0x1b2   : > { %1561 = vmatpush3.bf16.msra.mxu1 %v1560_v41  ;;  %v1383_v41 = vld [vmem:[%s2362_s20] ss:$0 sm:$0xff] }
 0x262   : > { %v840_v4 = vpop.f32.mrb[0].mxu1 }
 0x263   : > { %v1430_v5 = vpop.f32.mrb[1].mxu1  ;;  %v849_v8 = vmul.f32 %v847_v3, %v840_v4 }
 0x266   : > { %v922_v7 = vpop.f32.mrb[2].mxu1 }
 0x267   : > { %v931_v9 = vmul.f32 %v929_v6, %v922_v7  ;;  %v1435_v10 = vpop.f32.mrb[3].mxu1 }
 0x269   : > { %v932_v12 = vadd.f32 %v931_v9, %v849_v8  ;;  %v1378_v9 = vld [vmem:[%s2357_s30] ss:$0 sm:$0xff] }
 0x26b   : > { %v942_v13 = vadd.f32 %v1377_v11, %v932_v12  ;;  %v1379_v11 = vld [vmem:[%s2358_s21] ss:$0 sm:$0xff]  ;;  %s632_s21 = scalar_lea.vmem [#allocation12], %s1366_s14  ;;  %s1794_s14 = sshll.u32 %s1878_s25, 4  ;;  %s1795_s14 = int_to_ptr.vmem [resolvable:$false] %s1794_s14 }
 0x26c   : > { %s1210_s9 = sshll.u32 %s632_s21, 4  ;;  %s1796_s19 = scalar_lea.vmem %s1795_s14, 256  ;;  %s2265_s9 = int_to_ptr.vmem [resolvable:$true] %s1210_s9 }
 0x26d   : > { %945 = vadd.xlane.f32.xlu1 %v942_v13  ;;  %s1790_s29 = scalar_lea.vmem %s2265_s9, 128  ;;  %p1797_p2 = scmp.lt.s32.totalorder %s2265_s9, %s1795_s14 }
 0x26e   : > { %p1791_p3 = scmp.ne.s32.totalorder %s2265_s9, %s1790_s29  ;;  %p1798_p1 = scmp.lt.s32.totalorder %s1796_s19, %s1790_s29 }
 0x270   : > { %p1792_p7 = pnand %p1791_p3, %p2106_p5  ;;  %p1799_p4 = por %p1798_p1, %p1797_p2 }
 0x272   : > { %p1793_p12 = pneg %p1792_p7 }
 0x274   : > { %p1800_p0 = pnand %p1799_p4, %p1793_p12 }
 0x2fa   : > { %v946_v17 = vpop.xlane.xlu1 %945 }
 0x2fb   : > { %v2215_v18 = vmul.f32 0.03125, %v946_v17  ;;  %v1584_v17 = vpack.c.bf16 %v1085_v0, %v1084_v16 }
 0x2fd   : > { %v2218_v19 = vsub.f32 %v942_v13, %v2215_v18  ;;  %v952_v1 = vmul.f32 %v2215_v18, %v2215_v18  ;;  %1585 = vmatpush3.bf16.msra.mxu0 %v1584_v17  ;;  %v1380_v18 = vld [vmem:[%s2359_s27] ss:$0 sm:$0xff] }
 0x2ff   : > { %v949_v20 = vmul.f32 %v2218_v19, %v2218_v19  ;;  %v953_v2 = vmul.f32 96.0, %v952_v1 }
 0x301   : > { %950 = vadd.xlane.f32.xlu1 %v949_v20 }
 0x38e   : > { %v951_v3 = vpop.xlane.xlu1 %950 }
 0x38f   : > { %v954_v4 = vsub.f32 %v951_v3, %v953_v2 }
 0x391   : > { %v955_v5 = vmul.f32 0.03125, %v954_v4 }
 0x393   : > { %v956_v6 = vmax.f32 %v955_v5, 0.0 }
 0x395   : > { %v957_v7 = vadd.f32 1e-05, %v956_v6 }
 0x397   : > { %1672 = vrsqrt.f32 %v957_v7 }
 0x3a1   : > { %v1673_v8 = vpop.eup %1672 }
 0x3a2   : > { %v959_v10 = vmul.f32 %v1673_v8, %v2218_v19 }
 0x3a4   : > { %v966_v12 = vmul.f32 %v1378_v9, %v959_v10 }
 0x3a6   : > { %v973_v13 = vadd.f32 %v1379_v11, %v966_v12 }
 0x3a8   : > { %v974_v14 = vmax.f32 %v973_v13, 0.0 }
 0x3aa   : > { %v975_v15 = vadd.f32 %v974_v14, %v2181_v49 }
 0x3ac   : > { %1469 = vmatmul.mubr.f32.vlgmr.msra.gmra.mrb[4].mxu1 %v975_v15 }
 0x47f   : > { %v1065_v20 = vpop.f32.mrb[4].mxu1 }
 0x480   : > { %v1066_v19 = vadd.f32 %v1380_v18, %v1065_v20  ;;  %v1470_v21 = vpop.f32.mrb[5].mxu1 }
 0x482   : > { %v1069_v22 = vmax.f32 %v1066_v19, 0.0 }
 0x484   : > { %1504 = vmatmul.mubr.f32.vlgmr.msra.gmra.mrb[2].mxu0 %v1069_v22 }
 0x557   : > { %v1159_v24 = vpop.f32.mrb[2].mxu0 }
 0x558   : > { %v1160_v49 = vadd.f32 %v1381_v23, %v1159_v24  ;;  %v1505_v25 = vpop.f32.mrb[3].mxu0 }
 0x55a   : > { %v1163_v26 = vadd.f32 %v1160_v49, %v975_v15 }
 0x55c   : > { %1166 = vadd.xlane.f32.xlu0 %v1163_v26 }
 0x5e9   : > { %v1167_v27 = vpop.xlane.xlu0 %1166 }
 0x5ea   : > { %v1168_v28 = vmul.f32 0.03125, %v1167_v27 }
 0x5ec   : > { %v1169_v29 = vsub.f32 %v1163_v26, %v1168_v28  ;;  %v1173_v31 = vmul.f32 %v1168_v28, %v1168_v28 }
 0x5ee   : > { %v1170_v30 = vmul.f32 %v1169_v29, %v1169_v29  ;;  %v1174_v32 = vmul.f32 96.0, %v1173_v31 }
 0x5f0   : > { %1171 = vadd.xlane.f32.xlu1 %v1170_v30 }
 0x67d   : > { %v1172_v33 = vpop.xlane.xlu1 %1171 }
 0x67e   : > { %v1175_v34 = vsub.f32 %v1172_v33, %v1174_v32 }
 0x680   : > { %v1176_v35 = vmul.f32 0.03125, %v1175_v34 }
 0x682   : > { %v1177_v36 = vmax.f32 %v1176_v35, 0.0 }
 0x684   : > { %v1178_v37 = vadd.f32 1e-05, %v1177_v36 }
 0x686   : > { %1674 = vrsqrt.f32 %v1178_v37 }
 0x690   : > { %v1675_v38 = vpop.eup %1674 }
 0x691   : > { %v1180_v40 = vmul.f32 %v1675_v38, %v1169_v29 }
 0x693   : > { %v1187_v42 = vmul.f32 %v1382_v39, %v1180_v40 }
 0x695   : > { %v1194_v43 = vadd.f32 %v1383_v41, %v1187_v42 }
 0x697   : > { %1195 = vst [vmem:[%s632_s21] sm:$0xff] %v1194_v43 }
 0x698   : > { %1803 = shalt.err (!%p1800_p0)
}
 0x699   : > { %s1804_s13 = scalar_lea.hbm %s2263_s15, 128  ;;  %s1808_s30 = scalar_lea.hbm %s2363_s11, 256 }
 0x69a   : > { %p1805_p9 = scmp.ne.s32.totalorder %s2263_s15, %s1804_s13  ;;  %p1809_p13 = scmp.lt.u32.totalorder %s2263_s15, %s2363_s11 }
 0x69b   : > { %p1810_p6 = scmp.lt.u32.totalorder %s1808_s30, %s1804_s13  ;;  %p1812_p3 = scmp.lt.u32.totalorder %s1804_s13, %s2263_s15 }
 0x69c   : > { %p1806_p11 = pnand %p1805_p9, %p2106_p5 }
 0x69d   : > { %p1811_p10 = por %p1810_p6, %p1809_p13 }
 0x69e   : > { %p1807_p8 = pneg %p1806_p11 }
 0x69f   : > { %p1813_p7 = por %p1812_p3, %p1811_p10 }
 0x6a1   : > { %p1814_p12 = pnand %p1813_p7, %p1807_p8 }
 0x6a3   : > { %1817 = shalt.err (!%p1814_p12)
}
 0x6a4   : > { %1600 = dma.vmem_to_hbm [thread:$0]  (%p2106_p5), %s2265_s9, 128, %s2263_s15, %s1197_s0  }
 0x6a5 PF: > { %s2364_s21 = sld [smem:[#allocation17_spill]]  ;;  %s2365_s5 = sld [smem:[#allocation18_spill]] }
 0x6a6   : > { %p2367_p1 = scmp.ge.s32.totalorder %s1864_s24, 2 }
 0x6ab   : > { %s1222_s27 = sand.u32 1, %s2364_s21   ;;  %p2366_p2 = scmp.ne.s32.totalorder %s2365_s5, 0 }
 0x6ac   : > { %s1223_s29 = scalar_lea.sflag [#allocation6], %s1222_s27 }
 0x6ad   : > { %p1617_p4 = pnand %p2367_p1, %p2366_p2 }
 0x6af   : > { %1847 = dma.done.wait (!%p1617_p4), %s1223_s29, 128  }
 0x6b0   : > { %1849 = vsyncadd (!%p1617_p4), %s1223_s29, 4294967168  ;;  %p31_p0 = scmp.ge.s32.totalorder %s2074_s28, 4   ;;  %s2368_s21 = smov %s1856_s22 }
 0x6b1   : > { %s2369_s22 = smov %s1860_s23  ;;  %s2370_s23 = smov %s2102_s16 }
 0x6b2   : > { %s2371_s24 = smov %s2074_s28  ;;  %33 = sbr.rel (!%p31_p0) target bundleno = 17 (0x11), region = 153 }
 0x6b9   :  { %1228 = vsyncpa [#allocation5], 1 }
 0x6ba   :  { %1230 = vsyncpa [#allocation5 + $0x1], 1 }
 0x6bb   :  { %1231 = vsyncpa [#allocation8], 1 }
 0x6bc   :  { %1232 = vsyncpa [#allocation11], 1 }
 0x6bd   :  { %1233 = vsyncpa [#allocation6], 1 }
 0x6be   :  { %1235 = vsyncpa [#allocation6 + $0x1], 1 }

</bundles_post_ra>
